<compile_context>
chip_gen: v7x
topology: tpu7x:2x2x1
jax: 0.10.0
libtpu: 0.0.40
codegen_flags: <defaults>
</compile_context>

<pallas_src>
import functools

import jax
import jax.numpy as jnp
from jax.experimental import pallas as pl
from jax.experimental.pallas import tpu as pltpu

IN_DIM = 784
HID_DIM = 784
OUT_DIM = 10
OUT_PAD = 128   # lane-dense padded output width
MAX_TB = 128    # batch tile


def mlp_kernel(x_ref, w1_ref, b1_ref, w2_ref, b2_ref, o_ref):
    # x_ref: (TB, 784) f32   w1_ref: (784, 784) bf16   b1_ref: (1, 784) f32
    # w2_ref: (784, 128) bf16   b2_ref: (1, 128) f32   o_ref: (TB, 128) f32
    x = x_ref[...].astype(jnp.bfloat16)
    h = jnp.dot(x, w1_ref[...], preferred_element_type=jnp.float32)
    h = jnp.maximum(h + b1_ref[...], 0.0)                    # f32 bias + ReLU (VPU)
    y = jnp.dot(h.astype(jnp.bfloat16), w2_ref[...],
                preferred_element_type=jnp.float32)
    o_ref[...] = (y + b2_ref[...]).astype(o_ref.dtype)


def prepare_params(w1, b1, w2, b2):
    """One-time weight prep (do NOT call per forward step).

    w1: (784, 784) [out, in] f32, b1: (784,), w2: (10, 784) [out, in], b2: (10,)
    Returns (w1_t bf16 (784,784), b1 f32 (1,784), w2_t_pad bf16 (784,128),
             b2_pad f32 (1,128)).
    """
    w1_t = jnp.asarray(w1.T, dtype=jnp.bfloat16)              # (in, out)
    b1_2d = jnp.asarray(b1, dtype=jnp.float32).reshape(1, HID_DIM)
    w2_t = jnp.asarray(w2.T, dtype=jnp.bfloat16)              # (784, 10)
    w2_t_pad = jnp.zeros((HID_DIM, OUT_PAD), jnp.bfloat16).at[:, :OUT_DIM].set(w2_t)
    b2_pad = jnp.zeros((1, OUT_PAD), jnp.float32).at[0, :OUT_DIM].set(
        jnp.asarray(b2, dtype=jnp.float32))
    return w1_t, b1_2d, w2_t_pad, b2_pad


@functools.partial(jax.jit, static_argnames=())
def baseline_forward(x, w1_t, b1_2d, w2_t_pad, b2_pad):
    """x: (B, 784) f32. Returns (B, 10) f32. Params from prepare_params()."""
    B = x.shape[0]
    # Pick batch tile: 128 for big batches, else round B up to a sublane multiple.
    if B >= MAX_TB:
        tb = MAX_TB
    else:
        tb = ((B + 7) // 8) * 8
    n_tiles = pl.cdiv(B, tb)
    b_pad = n_tiles * tb
    if b_pad != B:
        x = jnp.pad(x, ((0, b_pad - B), (0, 0)))

    bytes_accessed = (
        x.size * 4 + w1_t.size * 2 + b1_2d.size * 4
        + w2_t_pad.size * 2 + b2_pad.size * 4 + b_pad * OUT_PAD * 4)
    cost = pl.CostEstimate(
        flops=2 * b_pad * (IN_DIM * HID_DIM + HID_DIM * OUT_PAD),
        bytes_accessed=bytes_accessed,
        transcendentals=0)

    out = pl.pallas_call(
        mlp_kernel,
        out_shape=jax.ShapeDtypeStruct((b_pad, OUT_PAD), jnp.float32),
        grid=(n_tiles,),
        in_specs=[
            pl.BlockSpec((tb, IN_DIM), lambda i: (i, 0)),        # x: tiled on batch
            pl.BlockSpec((IN_DIM, HID_DIM), lambda i: (0, 0)),   # w1_t: resident
            pl.BlockSpec((1, HID_DIM), lambda i: (0, 0)),        # b1: resident
            pl.BlockSpec((HID_DIM, OUT_PAD), lambda i: (0, 0)),  # w2_t: resident
            pl.BlockSpec((1, OUT_PAD), lambda i: (0, 0)),        # b2: resident
        ],
        out_specs=pl.BlockSpec((tb, OUT_PAD), lambda i: (i, 0)),
        compiler_params=pltpu.CompilerParams(
            dimension_semantics=("parallel",)),
        cost_estimate=cost,
    )(x, w1_t, b1_2d, w2_t_pad, b2_pad)

    return out[:B, :OUT_DIM]


def init_params(key):
    """Deterministic init mimicking PyTorch nn.Linear default (U(-k, k), k=1/sqrt(fan_in))."""
    k1, k2, k3, k4 = jax.random.split(key, 4)
    bound1 = 1.0 / jnp.sqrt(IN_DIM)
    w1 = jax.random.uniform(k1, (HID_DIM, IN_DIM), jnp.float32, -bound1, bound1)
    b1 = jax.random.uniform(k2, (HID_DIM,), jnp.float32, -bound1, bound1)
    bound2 = 1.0 / jnp.sqrt(HID_DIM)
    w2 = jax.random.uniform(k3, (OUT_DIM, HID_DIM), jnp.float32, -bound2, bound2)
    b2 = jax.random.uniform(k4, (OUT_DIM,), jnp.float32, -bound2, bound2)
    return w1, b1, w2, b2


if __name__ == "__main__":
    key = jax.random.PRNGKey(0)
    k_x, k_p = jax.random.split(key)

    B = 8
    x = jax.random.normal(k_x, (B, IN_DIM), jnp.float32)
    w1, b1, w2, b2 = init_params(k_p)

    # One-time weight prep (outside the forward hot path).
    params = prepare_params(w1, b1, w2, b2)

    out = baseline_forward(x, *params)
    out = jax.block_until_ready(out)
    assert out.shape == (B, OUT_DIM)

    # Reference 1: f32 reference (loose tolerance due to bf16 weights/inputs).
    ref_f32 = jnp.maximum(x @ w1.T + b1, 0.0) @ w2.T + b2
    assert jnp.allclose(out, ref_f32, atol=2e-2, rtol=2e-2)

    # Reference 2: bf16-matched reference (tight tolerance).
    w1_t, b1_2d, w2_t_pad, b2_pad = params
    h_ref = jnp.maximum(
        jnp.dot(x.astype(jnp.bfloat16), w1_t, preferred_element_type=jnp.float32)
        + b1_2d, 0.0)
    ref_bf16 = (jnp.dot(h_ref.astype(jnp.bfloat16), w2_t_pad,
                        preferred_element_type=jnp.float32)
                + b2_pad)[:, :OUT_DIM]
    assert jnp.allclose(out, ref_bf16, atol=1e-3, rtol=1e-3)

    print("KERNEL_OK")
</pallas_src>

<mosaic_0001>
module attributes {stable_mosaic.version = 11 : i64} {
  func.func @mlp_kernel(%arg0: i32, %arg1: memref<8x784xf32, #tpu.memory_space<vmem>>, %arg2: memref<784x784xbf16, #tpu.memory_space<vmem>>, %arg3: memref<1x784xf32, #tpu.memory_space<vmem>>, %arg4: memref<784x128xbf16, #tpu.memory_space<vmem>>, %arg5: memref<1x128xf32, #tpu.memory_space<vmem>>, %arg6: memref<8x128xf32, #tpu.memory_space<vmem>>) attributes {dimension_semantics = [#tpu.dimension_semantics<parallel>], iteration_bounds = array<i64: 1>, scalar_prefetch = 0 : i64, scratch_operands = 0 : i64, tpu.core_type = #tpu.core_type<tc>, window_params = [{transform_indices = @transform_0, window_bounds = array<i64: 8, 784>}, {pipeline_mode = #tpu.pipeline_mode<synchronous>, transform_indices = @transform_1, window_bounds = array<i64: 784, 784>}, {pipeline_mode = #tpu.pipeline_mode<synchronous>, transform_indices = @transform_2, window_bounds = array<i64: 1, 784>}, {pipeline_mode = #tpu.pipeline_mode<synchronous>, transform_indices = @transform_3, window_bounds = array<i64: 784, 128>}, {pipeline_mode = #tpu.pipeline_mode<synchronous>, transform_indices = @transform_4, window_bounds = array<i64: 1, 128>}, {transform_indices = @transform_5, window_bounds = array<i64: 8, 128>}]} {
    %c0 = arith.constant 0 : index
    %c0_0 = arith.constant 0 : index
    %0 = vector.load %arg1[%c0, %c0_0] : memref<8x784xf32, #tpu.memory_space<vmem>>, vector<8x784xf32>
    %1 = arith.truncf %0 : vector<8x784xf32> to vector<8x784xbf16>
    %c0_1 = arith.constant 0 : index
    %c0_2 = arith.constant 0 : index
    %2 = vector.load %arg2[%c0_1, %c0_2] : memref<784x784xbf16, #tpu.memory_space<vmem>>, vector<784x784xbf16>
    %cst = arith.constant dense<0.000000e+00> : vector<8x784xf32>
    %3 = tpu.matmul %1, %2, %cst {dimension_numbers = #tpu.dot_dimension_numbers<[1], [0], [0], [1], [0, 0, 1, 1], [], []>} : vector<8x784xbf16>, vector<784x784xbf16>, vector<8x784xf32> -> vector<8x784xf32>
    %c0_3 = arith.constant 0 : index
    %c0_4 = arith.constant 0 : index
    %4 = vector.load %arg3[%c0_3, %c0_4] : memref<1x784xf32, #tpu.memory_space<vmem>>, vector<1x784xf32>
    %5 = vector.broadcast %4 : vector<1x784xf32> to vector<8x784xf32>
    %6 = arith.addf %3, %5 : vector<8x784xf32>
    %cst_5 = arith.constant 0.000000e+00 : f32
    %7 = vector.broadcast %cst_5 : f32 to vector<8x784xf32>
    %8 = arith.maximumf %6, %7 : vector<8x784xf32>
    %9 = arith.truncf %8 : vector<8x784xf32> to vector<8x784xbf16>
    %c0_6 = arith.constant 0 : index
    %c0_7 = arith.constant 0 : index
    %10 = vector.load %arg4[%c0_6, %c0_7] : memref<784x128xbf16, #tpu.memory_space<vmem>>, vector<784x128xbf16>
    %cst_8 = arith.constant dense<0.000000e+00> : vector<8x128xf32>
    %11 = tpu.matmul %9, %10, %cst_8 {dimension_numbers = #tpu.dot_dimension_numbers<[1], [0], [0], [1], [0, 0, 1, 1], [], []>} : vector<8x784xbf16>, vector<784x128xbf16>, vector<8x128xf32> -> vector<8x128xf32>
    %c0_9 = arith.constant 0 : index
    %c0_10 = arith.constant 0 : index
    %12 = vector.load %arg5[%c0_9, %c0_10] : memref<1x128xf32, #tpu.memory_space<vmem>>, vector<1x128xf32>
    %13 = vector.broadcast %12 : vector<1x128xf32> to vector<8x128xf32>
    %14 = arith.addf %11, %13 : vector<8x128xf32>
    %c0_11 = arith.constant 0 : index
    %c0_12 = arith.constant 0 : index
    %15 = vector.load %arg6[%c0_11, %c0_12] : memref<8x128xf32, #tpu.memory_space<vmem>>, vector<8x128xf32>
    tpu.vector_store %arg6[%c0_11, %c0_12], %14 {strides = array<i32>} : memref<8x128xf32, #tpu.memory_space<vmem>>, vector<8x128xf32>,
    return
  }
  func.func @transform_0(%arg0: i32) -> (i32, i32) {
    %c0_i32 = arith.constant 0 : i32
    %c0_i32_0 = arith.constant 0 : i32
    return %arg0, %c0_i32 : i32, i32
  }
  func.func @transform_1(%arg0: i32) -> (i32, i32) {
    %c0_i32 = arith.constant 0 : i32
    %c0_i32_0 = arith.constant 0 : i32
    %c0_i32_1 = arith.constant 0 : i32
    return %c0_i32, %c0_i32_0 : i32, i32
  }
  func.func @transform_2(%arg0: i32) -> (i32, i32) {
    %c0_i32 = arith.constant 0 : i32
    %c0_i32_0 = arith.constant 0 : i32
    %c0_i32_1 = arith.constant 0 : i32
    return %c0_i32, %c0_i32_0 : i32, i32
  }
  func.func @transform_3(%arg0: i32) -> (i32, i32) {
    %c0_i32 = arith.constant 0 : i32
    %c0_i32_0 = arith.constant 0 : i32
    %c0_i32_1 = arith.constant 0 : i32
    return %c0_i32, %c0_i32_0 : i32, i32
  }
  func.func @transform_4(%arg0: i32) -> (i32, i32) {
    %c0_i32 = arith.constant 0 : i32
    %c0_i32_0 = arith.constant 0 : i32
    %c0_i32_1 = arith.constant 0 : i32
    return %c0_i32, %c0_i32_0 : i32, i32
  }
  func.func @transform_5(%arg0: i32) -> (i32, i32) {
    %c0_i32 = arith.constant 0 : i32
    %c0_i32_0 = arith.constant 0 : i32
    return %arg0, %c0_i32 : i32, i32
  }
}

</mosaic_0001>

<bundles_post_ra>
// kernel: baseline_forward.1
= control target key start
LH: loop header
LB: loop body
LE: loop exit
PB: predicated region body
PF: predicated region fallthrough
CT: control target
= control target key end

     0   :  { %10 = vsyncpa [#allocation3], 0  ;;  %s5014_s0 = inlined_call_operand.hbm [shape: f32[8,784], index: 0, kind: input, shape index: {}]   ;;  %s5015_s1 = inlined_call_operand.hbm [shape: bf16[784,784], index: 1, kind: input, shape index: {}]   ;;  %s5016_s2 = inlined_call_operand.hbm [shape: f32[1,784], index: 2, kind: input, shape index: {}]   ;;  %s5017_s3 = inlined_call_operand.hbm [shape: bf16[784,128], index: 3, kind: input, shape index: {}]   ;;  %s5018_s4 = inlined_call_operand.hbm [shape: f32[1,128], index: 4, kind: input, shape index: {}]   ;;  %s5019_s5 = inlined_call_operand.hbm [shape: f32[8,128], index: 5, kind: output, shape index: {}]  }
   0x1   :  { %11 = vsyncpa [#allocation6], 0 }
   0x2   :  { %12 = vsyncpa [#allocation9], 0 }
   0x3   :  { %13 = vsyncpa [#allocation4], 0  ;;  %s4819_s18 = smov [#allocation5]   ;;  %s4679_s22 = scalar_lea.hbm %s5015_s1, 43904 }
   0x4   :  { %s29_s19 = sshll.u32 %s4819_s18, 4  ;;  %p4680_p0 = scmp.ne.s32.totalorder %s5015_s1, %s4679_s22  ;;  %s30_s19 = int_to_ptr.vmem [resolvable:$true] %s29_s19 }
   0x5   :  { %p4683_p1 = scmp.lt.u32.totalorder %s4679_s22, %s5015_s1 }
   0x7   :  { %p4685_p2 = pnand %p4683_p1, %p4680_p0 }
   0x9   :  { %4688 = shalt.err (!%p4685_p2)
}
   0xa   :  { %s4689_s27 = scalar_lea.vmem %s30_s19, 43904  ;;  %p4694_p4 = scmp.lt.s32.totalorder %s30_s19, %s30_s19 }
   0xb   :  { %p4690_p3 = scmp.ne.s32.totalorder %s30_s19, %s4689_s27  ;;  %p4695_p5 = scmp.lt.s32.totalorder %s4689_s27, %s4689_s27 }
   0xd   :  { %p4696_p6 = por %p4695_p5, %p4694_p4 }
   0xf   :  { %p4697_p7 = pnand %p4696_p6, %p4690_p3 }
  0x11   :  { %4700 = shalt.err (!%p4697_p7)
}
  0x12   :  { %s4820_s28 = smov 448   ;;  %s4821_s29 = smov 28  }
  0x13   :  { %35 = dma.hbm_to_vmem [thread:$0]  %s5015_s1, 43904, %s30_s19, [#allocation6], %s4820_s28, %s4820_s28, %s4821_s29  }
  0x14   :  { %s4822_s7 = smov [#allocation8]   ;;  %s4701_s11 = scalar_lea.hbm %s5017_s3, 6272 }
  0x15   :  { %s51_s8 = sshll.u32 %s4822_s7, 4  ;;  %p4702_p8 = scmp.ne.s32.totalorder %s5017_s3, %s4701_s11  ;;  %s52_s8 = int_to_ptr.vmem [resolvable:$true] %s51_s8 }
  0x16   :  { %p4705_p9 = scmp.lt.u32.totalorder %s4701_s11, %s5017_s3 }
  0x18   :  { %p4707_p10 = pnand %p4705_p9, %p4702_p8 }
  0x1a   :  { %4710 = shalt.err (!%p4707_p10)
}
  0x1b   :  { %s4711_s16 = scalar_lea.vmem %s52_s8, 6272  ;;  %p4716_p12 = scmp.lt.s32.totalorder %s52_s8, %s52_s8 }
  0x1c   :  { %p4712_p11 = scmp.ne.s32.totalorder %s52_s8, %s4711_s16  ;;  %p4717_p13 = scmp.lt.s32.totalorder %s4711_s16, %s4711_s16 }
  0x1e   :  { %p4718_p0 = por %p4717_p13, %p4716_p12 }
  0x20   :  { %p4719_p1 = pnand %p4718_p0, %p4712_p11 }
  0x22   :  { %4722 = shalt.err (!%p4719_p1)
}
  0x23   :  { %s4823_s1 = smov 64   ;;  %s4824_s17 = smov 4  }
  0x24   :  { %57 = dma.hbm_to_vmem [thread:$0]  %s5017_s3, 6272, %s52_s8, [#allocation9], %s4823_s1, %s4823_s1, %s4824_s17  }
  0x25   :  { %s4825_s20 = smov [#allocation2]   ;;  %s4826_s22 = smov [#allocation7]  }
  0x26   :  { %s20_s21 = sshll.u32 %s4825_s20, 4  ;;  %s42_s23 = sshll.u32 %s4826_s22, 4  ;;  %s21_s21 = int_to_ptr.vmem [resolvable:$true] %s20_s21  ;;  %s43_s23 = int_to_ptr.vmem [resolvable:$true] %s42_s23 }
  0x27   :  { %s4723_s26 = scalar_lea.hbm %s5014_s0, 896 }
  0x28   :  { %p4724_p2 = scmp.ne.s32.totalorder %s5014_s0, %s4723_s26  ;;  %p4727_p3 = scmp.lt.u32.totalorder %s4723_s26, %s5014_s0 }
  0x2a   :  { %p4729_p4 = pnand %p4727_p3, %p4724_p2 }
  0x2c   :  { %4732 = shalt.err (!%p4729_p4)
}
  0x2d   :  { %s4733_s3 = scalar_lea.vmem %s21_s21, 896  ;;  %p4738_p6 = scmp.lt.s32.totalorder %s21_s21, %s21_s21 }
  0x2e   :  { %p4734_p5 = scmp.ne.s32.totalorder %s21_s21, %s4733_s3  ;;  %p4739_p7 = scmp.lt.s32.totalorder %s4733_s3, %s4733_s3 }
  0x30   :  { %p4740_p8 = por %p4739_p7, %p4738_p6 }
  0x32   :  { %p4741_p9 = pnand %p4740_p8, %p4734_p5 }
  0x34   :  { %4744 = shalt.err (!%p4741_p9)
}
  0x35   :  { %23 = dma.hbm_to_vmem [thread:$0]  %s5014_s0, 896, %s21_s21, [#allocation3]  }
  0x36   :  { %s4745_s10 = scalar_lea.hbm %s5016_s2, 112 }
  0x37   :  { %p4746_p10 = scmp.ne.s32.totalorder %s5016_s2, %s4745_s10  ;;  %p4749_p11 = scmp.lt.u32.totalorder %s4745_s10, %s5016_s2 }
  0x39   :  { %p4751_p12 = pnand %p4749_p11, %p4746_p10 }
  0x3b   :  { %4754 = shalt.err (!%p4751_p12)
}
  0x3c   :  { %s4755_s15 = scalar_lea.vmem %s43_s23, 112  ;;  %s4759_s16 = scalar_lea.vmem %s43_s23, 128 }
  0x3d   :  { %p4756_p13 = scmp.ne.s32.totalorder %s43_s23, %s4755_s15  ;;  %p4760_p0 = scmp.lt.s32.totalorder %s43_s23, %s43_s23 }
  0x3e   :  { %p4761_p1 = scmp.lt.s32.totalorder %s4759_s16, %s4755_s15 }
  0x40   :  { %p4762_p2 = por %p4761_p1, %p4760_p0 }
  0x42   :  { %p4763_p3 = pnand %p4762_p2, %p4756_p13 }
  0x44   :  { %4766 = shalt.err (!%p4763_p3)
}
  0x45   :  { %45 = dma.hbm_to_vmem [thread:$0]  %s5016_s2, 112, %s43_s23, [#allocation6]  }
  0x46   :  { %s4827_s17 = smov [#allocation10]   ;;  %s4767_s21 = scalar_lea.hbm %s5018_s4, 16 }
  0x47   :  { %s64_s18 = sshll.u32 %s4827_s17, 4  ;;  %p4768_p4 = scmp.ne.s32.totalorder %s5018_s4, %s4767_s21  ;;  %s65_s18 = int_to_ptr.vmem [resolvable:$true] %s64_s18 }
  0x48   :  { %p4771_p5 = scmp.lt.u32.totalorder %s4767_s21, %s5018_s4 }
  0x4a   :  { %p4773_p6 = pnand %p4771_p5, %p4768_p4 }
  0x4c   :  { %4776 = shalt.err (!%p4773_p6)
}
  0x4d   :  { %s4777_s27 = scalar_lea.vmem %s65_s18, 16  ;;  %s4781_s2 = scalar_lea.vmem %s65_s18, 32 }
  0x4e   :  { %p4778_p7 = scmp.ne.s32.totalorder %s65_s18, %s4777_s27  ;;  %p4782_p8 = scmp.lt.s32.totalorder %s65_s18, %s65_s18 }
  0x4f   :  { %p4783_p9 = scmp.lt.s32.totalorder %s4781_s2, %s4777_s27 }
  0x51   :  { %p4784_p10 = por %p4783_p9, %p4782_p8 }
  0x53   :  { %p4785_p11 = pnand %p4784_p10, %p4778_p7 }
  0x55   :  { %4788 = shalt.err (!%p4785_p11)
}
  0x56   :  { %67 = dma.hbm_to_vmem [thread:$0]  %s5018_s4, 16, %s65_s18, [#allocation9]  }
  0x57   :  { %4811 = dma.done.wait [#allocation3], 896  }
  0x58   :  { %4812 = vsyncadd [#allocation3], 4294966400 }
  0x59   :  { %4813 = dma.done.wait [#allocation6], 44016  }
  0x5a   :  { %4814 = vsyncadd [#allocation6], 4294923280 }
  0x5b   :  { %4815 = dma.done.wait [#allocation9], 6288  }
  0x5c   :  { %4816 = vsyncadd [#allocation9], 4294961008  ;;  %v4828_v0 = vmov 0   ;;  %v4140_v1 = vld [vmem:[#allocation5 + $0x4] ss:$28 sps:$4 sm:$0xff]   ;;  %v90_v9 = vld [vmem:[#allocation2 + $0x30] sm:$0xff] }
  0x5d   :  { %2450 = vmatprep.mubr.bf16.mxu1 %v4828_v0  ;;  %v4142_v2 = vld [vmem:[#allocation5 + $0xa84] ss:$28 sps:$4 sm:$0xff]   ;;  %2295 = vmatprep.subr.bf16.mxu0 %v4140_v1  ;;  %v4146_v5 = vld [vmem:[#allocation5 + $0x3c] ss:$28 sps:$4 sm:$0xff]   ;;  %v4150_v7 = vld [vmem:[#allocation5 + $0xc] ss:$28 sps:$4 sm:$0xff]   ;;  %v4923_v10 = vpack.c.bf16 %v90_v9, %v90_v9 }
  0x5e   :  { %v4144_v3 = vld [vmem:[#allocation5] ss:$28 sps:$4 sm:$0xff]   ;;  %2418 = vmatprep.subr.bf16.mxu1 %v4142_v2  ;;  %v4148_v6 = vld [vmem:[#allocation5 + $0x8] ss:$28 sps:$4 sm:$0xff]   ;;  %v4151_v8 = vld [vmem:[#allocation5 + $0x38] ss:$28 sps:$4 sm:$0xff]  }
  0x5f   :  { %v4145_v4 = vld [vmem:[#allocation5 + $0xa80] ss:$28 sps:$4 sm:$0xff]   ;;  %2296 = vmatpush1.bf16.msra.mxu0 %v4144_v3  ;;  %vm2291_vm0 = vcmask 130048   ;;  %v4152_v11 = vld [vmem:[#allocation5 + $0x74] ss:$28 sps:$4 sm:$0xff]   ;;  %vm4830_vm1 = vmmov 0  }
  0x60   :  { %2419 = vmatpush1.bf16.msra.mxu1 %v4145_v4  ;;  %2297 = vmatprep.subr.bf16.mxu0 %v4146_v5  ;;  %v4154_v12 = vld [vmem:[#allocation5 + $0x40] ss:$28 sps:$4 sm:$0xff]   ;;  %v4157_v14 = vld [vmem:[#allocation5 + $0x70] ss:$28 sps:$4 sm:$0xff]   ;;  %v4163_v17 = vld [vmem:[#allocation5 + $0xa8] ss:$28 sps:$4 sm:$0xff]  }
  0x61   :  { %2459 = vmatprep.subr.bf16.mxu1 %v4150_v7  ;;  %v4156_v13 = vld [vmem:[#allocation5 + $0x44] ss:$28 sps:$4 sm:$0xff]   ;;  %v4158_v15 = vld [vmem:[#allocation5 + $0xac] ss:$28 sps:$4 sm:$0xff]   ;;  %v4162_v16 = vld [vmem:[#allocation5 + $0x7c] ss:$28 sps:$4 sm:$0xff]  }
  0x62   :  { %v4160_v18 = vld [vmem:[#allocation5 + $0x78] ss:$28 sps:$4 sm:$0xff]   ;;  %v4164_v19 = vld [vmem:[#allocation5 + $0xe4] ss:$28 sps:$4 sm:$0xff]   ;;  %v4166_v21 = vld [vmem:[#allocation5 + $0xb0] ss:$28 sps:$4 sm:$0xff]  }
  0x63   :  { %2298 = vmatpush1.bf16.msra.mxu0 %v4151_v8  ;;  %3884 = vmatmul.mubr.msk.bf16.vlgmr.msra.gmra.mrb[0].mxu1 %vm2291_vm0, %v4923_v10  ;;  %v4168_v20 = vld [vmem:[#allocation5 + $0xb4] ss:$28 sps:$4 sm:$0xff]   ;;  %v4169_v22 = vld [vmem:[#allocation5 + $0xe0] ss:$28 sps:$4 sm:$0xff]   ;;  %v4174_v24 = vld [vmem:[#allocation5 + $0xec] ss:$28 sps:$4 sm:$0xff]  }
  0x64   :  { %2460 = vmatpush1.bf16.msra.mxu1 %v4148_v6  ;;  %2299 = vmatprep.subr.bf16.mxu0 %v4152_v11  ;;  %v4170_v23 = vld [vmem:[#allocation5 + $0x11c] ss:$28 sps:$4 sm:$0xff]   ;;  %v4172_v26 = vld [vmem:[#allocation5 + $0xe8] ss:$28 sps:$4 sm:$0xff]   ;;  %v4176_v27 = vld [vmem:[#allocation5 + $0x154] ss:$28 sps:$4 sm:$0xff]  }
  0x65   :  { %2461 = vmatprep.subr.bf16.mxu1 %v4156_v13  ;;  %v4175_v25 = vld [vmem:[#allocation5 + $0x118] ss:$28 sps:$4 sm:$0xff]   ;;  %v4180_v28 = vld [vmem:[#allocation5 + $0x124] ss:$28 sps:$4 sm:$0xff]   ;;  %v4181_v30 = vld [vmem:[#allocation5 + $0x150] ss:$28 sps:$4 sm:$0xff]  }
  0x66   :  { %v4178_v29 = vld [vmem:[#allocation5 + $0x120] ss:$28 sps:$4 sm:$0xff]   ;;  %v4182_v31 = vld [vmem:[#allocation5 + $0x18c] ss:$28 sps:$4 sm:$0xff]   ;;  %v4184_v34 = vld [vmem:[#allocation5 + $0x158] ss:$28 sps:$4 sm:$0xff]  }
  0x67   :  { %2300 = vmatpush1.bf16.msra.mxu0 %v4157_v14  ;;  %v4186_v32 = vld [vmem:[#allocation5 + $0x15c] ss:$28 sps:$4 sm:$0xff]   ;;  %v4187_v33 = vld [vmem:[#allocation5 + $0x188] ss:$28 sps:$4 sm:$0xff]   ;;  %v4192_v36 = vld [vmem:[#allocation5 + $0x194] ss:$28 sps:$4 sm:$0xff]  }
  0x68   :  { %2462 = vmatpush1.bf16.msra.mxu1 %v4154_v12  ;;  %2301 = vmatprep.subr.bf16.mxu0 %v4158_v15  ;;  %v4188_v35 = vld [vmem:[#allocation5 + $0x1c4] ss:$28 sps:$4 sm:$0xff]   ;;  %v4190_v37 = vld [vmem:[#allocation5 + $0x190] ss:$28 sps:$4 sm:$0xff]   ;;  %v4194_v39 = vld [vmem:[#allocation5 + $0x1fc] ss:$28 sps:$4 sm:$0xff]  }
  0x69   :  { %2463 = vmatprep.subr.bf16.mxu1 %v4162_v16  ;;  %v4193_v38 = vld [vmem:[#allocation5 + $0x1c0] ss:$28 sps:$4 sm:$0xff]   ;;  %v4198_v40 = vld [vmem:[#allocation5 + $0x1cc] ss:$28 sps:$4 sm:$0xff]   ;;  %v4199_v41 = vld [vmem:[#allocation5 + $0x1f8] ss:$28 sps:$4 sm:$0xff]  }
  0x6a   :  { %v4196_v42 = vld [vmem:[#allocation5 + $0x1c8] ss:$28 sps:$4 sm:$0xff]   ;;  %v4200_v43 = vld [vmem:[#allocation5 + $0x234] ss:$28 sps:$4 sm:$0xff]   ;;  %v4202_v45 = vld [vmem:[#allocation5 + $0x200] ss:$28 sps:$4 sm:$0xff]  }
  0x6b   :  { %2302 = vmatpush1.bf16.msra.mxu0 %v4163_v17  ;;  %v4204_v44 = vld [vmem:[#allocation5 + $0x204] ss:$28 sps:$4 sm:$0xff]   ;;  %v4205_v46 = vld [vmem:[#allocation5 + $0x230] ss:$28 sps:$4 sm:$0xff]   ;;  %v4210_v48 = vld [vmem:[#allocation5 + $0x23c] ss:$28 sps:$4 sm:$0xff]  }
  0x6c   :  { %2464 = vmatpush1.bf16.msra.mxu1 %v4160_v18  ;;  %2303 = vmatprep.subr.bf16.mxu0 %v4164_v19  ;;  %v4206_v47 = vld [vmem:[#allocation5 + $0x26c] ss:$28 sps:$4 sm:$0xff]   ;;  %v85_v49 = vld [vmem:[#allocation2 + $0x8] sm:$0xff]  ;;  %v4212_v53 = vld [vmem:[#allocation5 + $0x2a4] ss:$28 sps:$4 sm:$0xff]   ;;  %s4831_s4 = smov [#allocation11]  }
  0x6d   :  { %2465 = vmatprep.subr.bf16.mxu1 %v4168_v20  ;;  %v4211_v50 = vld [vmem:[#allocation5 + $0x268] ss:$28 sps:$4 sm:$0xff]   ;;  %v4927_v51 = vpack.c.bf16 %v85_v49, %v85_v49  ;;  %v4208_v52 = vld [vmem:[#allocation5 + $0x238] ss:$28 sps:$4 sm:$0xff]   ;;  %v4214_v55 = vld [vmem:[#allocation5 + $0x270] ss:$28 sps:$4 sm:$0xff]  }
  0x6e   :  { %v4216_v54 = vld [vmem:[#allocation5 + $0x274] ss:$28 sps:$4 sm:$0xff]   ;;  %v4217_v56 = vld [vmem:[#allocation5 + $0x2a0] ss:$28 sps:$4 sm:$0xff]   ;;  %v4222_v58 = vld [vmem:[#allocation5 + $0x2ac] ss:$28 sps:$4 sm:$0xff]  }
  0x6f   :  { %2304 = vmatpush1.bf16.msra.mxu0 %v4169_v22  ;;  %2327 = vmatprep.mubr.bf16.mxu0 %v4927_v51  ;;  %v4218_v57 = vld [vmem:[#allocation5 + $0x2dc] ss:$28 sps:$4 sm:$0xff]   ;;  %v4220_v59 = vld [vmem:[#allocation5 + $0x2a8] ss:$28 sps:$4 sm:$0xff]   ;;  %v4224_v61 = vld [vmem:[#allocation5 + $0x314] ss:$28 sps:$4 sm:$0xff]  }
  0x70   :  { %2466 = vmatpush1.bf16.msra.mxu1 %v4166_v21  ;;  %2305 = vmatprep.subr.bf16.mxu0 %v4170_v23  ;;  %v4223_v60 = vld [vmem:[#allocation5 + $0x2d8] ss:$28 sps:$4 sm:$0xff]   ;;  %v4228_v62 = vld [vmem:[#allocation5 + $0x2e4] ss:$28 sps:$4 sm:$0xff]   ;;  %v4229_v1 = vld [vmem:[#allocation5 + $0x310] ss:$28 sps:$4 sm:$0xff]  }
  0x71   :  { %2467 = vmatprep.subr.bf16.mxu1 %v4174_v24  ;;  %2491 = vmatprep.mubr.bf16.mxu1 %v4927_v51  ;;  %v4226_v63 = vld [vmem:[#allocation5 + $0x2e0] ss:$28 sps:$4 sm:$0xff]   ;;  %v4230_v2 = vld [vmem:[#allocation5 + $0x34c] ss:$28 sps:$4 sm:$0xff]   ;;  %v4232_v4 = vld [vmem:[#allocation5 + $0x318] ss:$28 sps:$4 sm:$0xff]  }
  0x72   :  { %v4234_v3 = vld [vmem:[#allocation5 + $0x31c] ss:$28 sps:$4 sm:$0xff]   ;;  %v4235_v5 = vld [vmem:[#allocation5 + $0x348] ss:$28 sps:$4 sm:$0xff]   ;;  %v4241_v8 = vld [vmem:[#allocation5 + $0x354] ss:$28 sps:$4 sm:$0xff]  }
  0x73   :  { %2306 = vmatpush1.bf16.msra.mxu0 %v4175_v25  ;;  %v84_v6 = vld [vmem:[#allocation2] sm:$0xff]  ;;  %v4238_v7 = vld [vmem:[#allocation5 + $0x384] ss:$28 sps:$4 sm:$0xff]   ;;  %v4244_v13 = vld [vmem:[#allocation5 + $0x3bc] ss:$28 sps:$4 sm:$0xff]   ;;  %s3530_s29 = sshll.u32 %s4831_s4, 4  ;;  %s3531_s29 = int_to_ptr.vmem [resolvable:$true] %s3530_s29 }
  0x74   :  { %2468 = vmatpush1.bf16.msra.mxu1 %v4172_v26  ;;  %2307 = vmatprep.subr.bf16.mxu0 %v4176_v27  ;;  %v4931_v9 = vpack.c.bf16 %v84_v6, %v84_v6  ;;  %v4236_v11 = vld [vmem:[#allocation5 + $0x380] ss:$28 sps:$4 sm:$0xff]   ;;  %v4239_v12 = vld [vmem:[#allocation5 + $0x350] ss:$28 sps:$4 sm:$0xff]   ;;  %v4242_v15 = vld [vmem:[#allocation5 + $0x3b8] ss:$28 sps:$4 sm:$0xff]   ;;  %p4794_p13 = scmp.lt.s32.totalorder %s3531_s29, %s3531_s29 }
  0x75   :  { %2469 = vmatprep.subr.bf16.mxu1 %v4180_v28  ;;  %v4247_v14 = vld [vmem:[#allocation5 + $0x38c] ss:$28 sps:$4 sm:$0xff]   ;;  %v4250_v17 = vld [vmem:[#allocation5 + $0x3f4] ss:$28 sps:$4 sm:$0xff]   ;;  %v4253_v18 = vld [vmem:[#allocation5 + $0x3c4] ss:$28 sps:$4 sm:$0xff]  }
  0x76   :  { %v4245_v16 = vld [vmem:[#allocation5 + $0x388] ss:$28 sps:$4 sm:$0xff]   ;;  %v4248_v19 = vld [vmem:[#allocation5 + $0x3f0] ss:$28 sps:$4 sm:$0xff]   ;;  %v4251_v20 = vld [vmem:[#allocation5 + $0x3c0] ss:$28 sps:$4 sm:$0xff]  }
  0x77   :  { %2308 = vmatpush1.bf16.msra.mxu0 %v4181_v30  ;;  %v4256_v21 = vld [vmem:[#allocation5 + $0x42c] ss:$28 sps:$4 sm:$0xff]   ;;  %v4259_v22 = vld [vmem:[#allocation5 + $0x3fc] ss:$28 sps:$4 sm:$0xff]   ;;  %v4262_v25 = vld [vmem:[#allocation5 + $0x464] ss:$28 sps:$4 sm:$0xff]  }
  0x78   :  { %2470 = vmatpush1.bf16.msra.mxu1 %v4178_v29  ;;  %2309 = vmatprep.subr.bf16.mxu0 %v4182_v31  ;;  %v4254_v23 = vld [vmem:[#allocation5 + $0x428] ss:$28 sps:$4 sm:$0xff]   ;;  %v4257_v24 = vld [vmem:[#allocation5 + $0x3f8] ss:$28 sps:$4 sm:$0xff]   ;;  %v4260_v27 = vld [vmem:[#allocation5 + $0x460] ss:$28 sps:$4 sm:$0xff]  }
  0x79   :  { %2471 = vmatprep.subr.bf16.mxu1 %v4186_v32  ;;  %v4265_v26 = vld [vmem:[#allocation5 + $0x434] ss:$28 sps:$4 sm:$0xff]   ;;  %v4268_v29 = vld [vmem:[#allocation5 + $0x49c] ss:$28 sps:$4 sm:$0xff]   ;;  %v4271_v30 = vld [vmem:[#allocation5 + $0x46c] ss:$28 sps:$4 sm:$0xff]  }
  0x7a   :  { %v4263_v28 = vld [vmem:[#allocation5 + $0x430] ss:$28 sps:$4 sm:$0xff]   ;;  %v4266_v31 = vld [vmem:[#allocation5 + $0x498] ss:$28 sps:$4 sm:$0xff]   ;;  %v4269_v32 = vld [vmem:[#allocation5 + $0x468] ss:$28 sps:$4 sm:$0xff]  }
  0x7b   :  { %2310 = vmatpush1.bf16.msra.mxu0 %v4187_v33  ;;  %v4274_v33 = vld [vmem:[#allocation5 + $0x4d4] ss:$28 sps:$4 sm:$0xff]   ;;  %v4325_v6 = vld [vmem:[#allocation5 + $0x664] ss:$28 sps:$4 sm:$0xff]   ;;  %s4789_s30 = scalar_lea.vmem %s3531_s29, 128 }
  0x7c   :  { %2472 = vmatpush1.bf16.msra.mxu1 %v4184_v34  ;;  %2311 = vmatprep.subr.bf16.mxu0 %v4188_v35  ;;  %v4277_v34 = vld [vmem:[#allocation5 + $0x4a4] ss:$28 sps:$4 sm:$0xff]   ;;  %v4290_v49 = vld [vmem:[#allocation5 + $0x578] ss:$28 sps:$4 sm:$0xff]   ;;  %p4790_p12 = scmp.ne.s32.totalorder %s3531_s29, %s4789_s30  ;;  %p4795_p0 = scmp.lt.s32.totalorder %s4789_s30, %s4789_s30 }
  0x7d   :  { %2473 = vmatprep.subr.bf16.mxu1 %v4192_v36  ;;  %v87_v35 = vld [vmem:[#allocation2 + $0x18] sm:$0xff] }
  0x7e   :  { %v4935_v36 = vpack.c.bf16 %v87_v35, %v87_v35  ;;  %v4358_v35 = vld [vmem:[#allocation5 + $0x7e4] ss:$28 sps:$4 sm:$0xff]   ;;  %p4796_p1 = por %p4795_p0, %p4794_p13 }
  0x7f   :  { %2312 = vmatpush1.bf16.msra.mxu0 %v4193_v38  ;;  %v4275_v38 = vld [vmem:[#allocation5 + $0x4a0] ss:$28 sps:$4 sm:$0xff]  }
  0x80   :  { %2474 = vmatpush1.bf16.msra.mxu1 %v4190_v37  ;;  %2313 = vmatprep.subr.bf16.mxu0 %v4194_v39  ;;  %v4272_v37 = vld [vmem:[#allocation5 + $0x4d0] ss:$28 sps:$4 sm:$0xff]   ;;  %p4797_p2 = pnand %p4796_p1, %p4790_p12 }
  0x81   :  { %2475 = vmatprep.subr.bf16.mxu1 %v4198_v40  ;;  %v4280_v39 = vld [vmem:[#allocation5 + $0x50c] ss:$28 sps:$4 sm:$0xff]   ;;  %v4283_v40 = vld [vmem:[#allocation5 + $0x4dc] ss:$28 sps:$4 sm:$0xff]  }
  0x83   :  { %2314 = vmatpush1.bf16.msra.mxu0 %v4199_v41  ;;  %v4278_v41 = vld [vmem:[#allocation5 + $0x508] ss:$28 sps:$4 sm:$0xff]  }
  0x84   :  { %2476 = vmatpush1.bf16.msra.mxu1 %v4196_v42  ;;  %2315 = vmatprep.subr.bf16.mxu0 %v4200_v43  ;;  %v4281_v42 = vld [vmem:[#allocation5 + $0x4d8] ss:$28 sps:$4 sm:$0xff]   ;;  %v4286_v43 = vld [vmem:[#allocation5 + $0x544] ss:$28 sps:$4 sm:$0xff]  }
  0x85   :  { %2477 = vmatprep.subr.bf16.mxu1 %v4204_v44  ;;  %v4289_v44 = vld [vmem:[#allocation5 + $0x514] ss:$28 sps:$4 sm:$0xff]  }
  0x87   :  { %2316 = vmatpush1.bf16.msra.mxu0 %v4205_v46  ;;  %v4287_v46 = vld [vmem:[#allocation5 + $0x510] ss:$28 sps:$4 sm:$0xff]  }
  0x88   :  { %2478 = vmatpush1.bf16.msra.mxu1 %v4202_v45  ;;  %2317 = vmatprep.subr.bf16.mxu0 %v4206_v47  ;;  %v4284_v45 = vld [vmem:[#allocation5 + $0x540] ss:$28 sps:$4 sm:$0xff]  }
  0x89   :  { %2479 = vmatprep.subr.bf16.mxu1 %v4210_v48  ;;  %v4292_v47 = vld [vmem:[#allocation5 + $0x57c] ss:$28 sps:$4 sm:$0xff]   ;;  %v4295_v48 = vld [vmem:[#allocation5 + $0x54c] ss:$28 sps:$4 sm:$0xff]  }
  0x8b   :  { %2318 = vmatpush1.bf16.msra.mxu0 %v4211_v50  ;;  %v4293_v50 = vld [vmem:[#allocation5 + $0x548] ss:$28 sps:$4 sm:$0xff]  }
  0x8c   :  { %2480 = vmatpush1.bf16.msra.mxu1 %v4208_v52  ;;  %2319 = vmatprep.subr.bf16.mxu0 %v4212_v53  ;;  %v4298_v52 = vld [vmem:[#allocation5 + $0x5b4] ss:$28 sps:$4 sm:$0xff]   ;;  %v4301_v53 = vld [vmem:[#allocation5 + $0x584] ss:$28 sps:$4 sm:$0xff]  }
  0x8d   :  { %2481 = vmatprep.subr.bf16.mxu1 %v4216_v54  ;;  %v4296_v54 = vld [vmem:[#allocation5 + $0x5b0] ss:$28 sps:$4 sm:$0xff]  }
  0x8f   :  { %2320 = vmatpush1.bf16.msra.mxu0 %v4217_v56  ;;  %v4304_v56 = vld [vmem:[#allocation5 + $0x5ec] ss:$28 sps:$4 sm:$0xff]  }
  0x90   :  { %2482 = vmatpush1.bf16.msra.mxu1 %v4214_v55  ;;  %2321 = vmatprep.subr.bf16.mxu0 %v4218_v57  ;;  %v4299_v55 = vld [vmem:[#allocation5 + $0x580] ss:$28 sps:$4 sm:$0xff]  }
  0x91   :  { %2483 = vmatprep.subr.bf16.mxu1 %v4222_v58  ;;  %v4307_v57 = vld [vmem:[#allocation5 + $0x5bc] ss:$28 sps:$4 sm:$0xff]   ;;  %v4302_v58 = vld [vmem:[#allocation5 + $0x5e8] ss:$28 sps:$4 sm:$0xff]  }
  0x93   :  { %2322 = vmatpush1.bf16.msra.mxu0 %v4223_v60  ;;  %v4310_v60 = vld [vmem:[#allocation5 + $0x624] ss:$28 sps:$4 sm:$0xff]  }
  0x94   :  { %2484 = vmatpush1.bf16.msra.mxu1 %v4220_v59  ;;  %2323 = vmatprep.subr.bf16.mxu0 %v4224_v61  ;;  %v4305_v59 = vld [vmem:[#allocation5 + $0x5b8] ss:$28 sps:$4 sm:$0xff]  }
  0x95   :  { %2485 = vmatprep.subr.bf16.mxu1 %v4228_v62  ;;  %v4313_v61 = vld [vmem:[#allocation5 + $0x5f4] ss:$28 sps:$4 sm:$0xff]   ;;  %v4308_v62 = vld [vmem:[#allocation5 + $0x620] ss:$28 sps:$4 sm:$0xff]  }
  0x97   :  { %2324 = vmatpush1.bf16.msra.mxu0 %v4229_v1  ;;  %v4316_v1 = vld [vmem:[#allocation5 + $0x65c] ss:$28 sps:$4 sm:$0xff]  }
  0x98   :  { %2486 = vmatpush1.bf16.msra.mxu1 %v4226_v63  ;;  %2325 = vmatprep.subr.bf16.mxu0 %v4230_v2  ;;  %v4311_v63 = vld [vmem:[#allocation5 + $0x5f0] ss:$28 sps:$4 sm:$0xff]  }
  0x99   :  { %2487 = vmatprep.subr.bf16.mxu1 %v4234_v3  ;;  %v4319_v2 = vld [vmem:[#allocation5 + $0x62c] ss:$28 sps:$4 sm:$0xff]   ;;  %v4314_v3 = vld [vmem:[#allocation5 + $0x658] ss:$28 sps:$4 sm:$0xff]  }
  0x9b   :  { %2326 = vmatpush1.bf16.msra.mxu0 %v4235_v5  ;;  %v4322_v5 = vld [vmem:[#allocation5 + $0x694] ss:$28 sps:$4 sm:$0xff]  }
  0x9c   :  { %2488 = vmatpush1.bf16.msra.mxu1 %v4232_v4  ;;  %2336 = vmatprep.subr.bf16.mxu0 %v4238_v7  ;;  %v4317_v4 = vld [vmem:[#allocation5 + $0x628] ss:$28 sps:$4 sm:$0xff]   ;;  %v4320_v7 = vld [vmem:[#allocation5 + $0x690] ss:$28 sps:$4 sm:$0xff]  }
  0x9d   :  { %2489 = vmatprep.subr.bf16.mxu1 %v4241_v8  ;;  %v4323_v8 = vld [vmem:[#allocation5 + $0x660] ss:$28 sps:$4 sm:$0xff]  }
  0x9e   :  { %2328 = vmatmul.mubr.bf16.vlgmr.msra.gmra.mrb[0].mxu0 %v4931_v9 }
  0x9f   :  { %2337 = vmatpush1.bf16.msra.mxu0 %v4236_v11  ;;  %2368 = vmatprep.mubr.bf16.mxu0 %v4935_v36  ;;  %v4328_v11 = vld [vmem:[#allocation5 + $0x6cc] ss:$28 sps:$4 sm:$0xff]  }
  0xa0   :  { %2490 = vmatpush1.bf16.msra.mxu1 %v4239_v12  ;;  %2338 = vmatprep.subr.bf16.mxu0 %v4244_v13  ;;  %v4331_v12 = vld [vmem:[#allocation5 + $0x69c] ss:$28 sps:$4 sm:$0xff]   ;;  %v4326_v13 = vld [vmem:[#allocation5 + $0x6c8] ss:$28 sps:$4 sm:$0xff]  }
  0xa1   :  { %2500 = vmatprep.subr.bf16.mxu1 %v4247_v14  ;;  %v86_v14 = vld [vmem:[#allocation2 + $0x10] sm:$0xff] }
  0xa3   :  { %2339 = vmatpush1.bf16.msra.mxu0 %v4242_v15  ;;  %2492 = vmatmul.mubr.bf16.vlgmr.msra.gmra.mrb[4].mxu1 %v4931_v9  ;;  %v4329_v15 = vld [vmem:[#allocation5 + $0x698] ss:$28 sps:$4 sm:$0xff]  }
  0xa4   :  { %2501 = vmatpush1.bf16.msra.mxu1 %v4245_v16  ;;  %2340 = vmatprep.subr.bf16.mxu0 %v4250_v17  ;;  %v4334_v16 = vld [vmem:[#allocation5 + $0x704] ss:$28 sps:$4 sm:$0xff]   ;;  %v4337_v17 = vld [vmem:[#allocation5 + $0x6d4] ss:$28 sps:$4 sm:$0xff]  }
  0xa5   :  { %2502 = vmatprep.subr.bf16.mxu1 %v4253_v18  ;;  %2532 = vmatprep.mubr.bf16.mxu1 %v4935_v36  ;;  %v4939_v18 = vpack.c.bf16 %v86_v14, %v86_v14  ;;  %v4410_v14 = vld [vmem:[#allocation5 + $0x9d8] ss:$28 sps:$4 sm:$0xff]  }
  0xa7   :  { %2341 = vmatpush1.bf16.msra.mxu0 %v4248_v19  ;;  %v4332_v19 = vld [vmem:[#allocation5 + $0x700] ss:$28 sps:$4 sm:$0xff]  }
  0xa8   :  { %2503 = vmatpush1.bf16.msra.mxu1 %v4251_v20  ;;  %2342 = vmatprep.subr.bf16.mxu0 %v4256_v21  ;;  %v4335_v20 = vld [vmem:[#allocation5 + $0x6d0] ss:$28 sps:$4 sm:$0xff]   ;;  %v4340_v21 = vld [vmem:[#allocation5 + $0x73c] ss:$28 sps:$4 sm:$0xff]  }
  0xa9   :  { %2504 = vmatprep.subr.bf16.mxu1 %v4259_v22  ;;  %v89_v22 = vld [vmem:[#allocation2 + $0x28] sm:$0xff] }
  0xab   :  { %2343 = vmatpush1.bf16.msra.mxu0 %v4254_v23  ;;  %v4343_v23 = vld [vmem:[#allocation5 + $0x70c] ss:$28 sps:$4 sm:$0xff]  }
  0xac   :  { %2505 = vmatpush1.bf16.msra.mxu1 %v4257_v24  ;;  %2344 = vmatprep.subr.bf16.mxu0 %v4262_v25  ;;  %v4941_v24 = vpack.c.bf16 %v89_v22, %v89_v22  ;;  %v4338_v25 = vld [vmem:[#allocation5 + $0x738] ss:$28 sps:$4 sm:$0xff]  }
  0xad   :  { %2506 = vmatprep.subr.bf16.mxu1 %v4265_v26  ;;  %v4341_v26 = vld [vmem:[#allocation5 + $0x708] ss:$28 sps:$4 sm:$0xff]   ;;  %v4427_v22 = vld [vmem:[#allocation5 + $0xa1c] ss:$28 sps:$4 sm:$0xff]  }
  0xaf   :  { %2345 = vmatpush1.bf16.msra.mxu0 %v4260_v27  ;;  %v4346_v27 = vld [vmem:[#allocation5 + $0x774] ss:$28 sps:$4 sm:$0xff]  }
  0xb0   :  { %2507 = vmatpush1.bf16.msra.mxu1 %v4263_v28  ;;  %2346 = vmatprep.subr.bf16.mxu0 %v4268_v29  ;;  %v4349_v28 = vld [vmem:[#allocation5 + $0x744] ss:$28 sps:$4 sm:$0xff]   ;;  %v4344_v29 = vld [vmem:[#allocation5 + $0x770] ss:$28 sps:$4 sm:$0xff]  }
  0xb1   :  { %2508 = vmatprep.subr.bf16.mxu1 %v4271_v30  ;;  %v4347_v30 = vld [vmem:[#allocation5 + $0x740] ss:$28 sps:$4 sm:$0xff]  }
  0xb3   :  { %2347 = vmatpush1.bf16.msra.mxu0 %v4266_v31  ;;  %v4352_v31 = vld [vmem:[#allocation5 + $0x7ac] ss:$28 sps:$4 sm:$0xff]  }
  0xb4   :  { %2509 = vmatpush1.bf16.msra.mxu1 %v4269_v32  ;;  %2348 = vmatprep.subr.bf16.mxu0 %v4274_v33  ;;  %v4355_v32 = vld [vmem:[#allocation5 + $0x77c] ss:$28 sps:$4 sm:$0xff]   ;;  %v4350_v33 = vld [vmem:[#allocation5 + $0x7a8] ss:$28 sps:$4 sm:$0xff]  }
  0xb5   :  { %2510 = vmatprep.subr.bf16.mxu1 %v4277_v34  ;;  %v4353_v34 = vld [vmem:[#allocation5 + $0x778] ss:$28 sps:$4 sm:$0xff]  }
  0xb7   :  { %2349 = vmatpush1.bf16.msra.mxu0 %v4272_v37  ;;  %v4361_v37 = vld [vmem:[#allocation5 + $0x7b4] ss:$28 sps:$4 sm:$0xff]  }
  0xb8   :  { %2511 = vmatpush1.bf16.msra.mxu1 %v4275_v38  ;;  %2350 = vmatprep.subr.bf16.mxu0 %v4280_v39  ;;  %v4356_v38 = vld [vmem:[#allocation5 + $0x7e0] ss:$28 sps:$4 sm:$0xff]   ;;  %v4359_v39 = vld [vmem:[#allocation5 + $0x7b0] ss:$28 sps:$4 sm:$0xff]  }
  0xb9   :  { %2512 = vmatprep.subr.bf16.mxu1 %v4283_v40  ;;  %v4364_v40 = vld [vmem:[#allocation5 + $0x81c] ss:$28 sps:$4 sm:$0xff]  }
  0xbb   :  { %2351 = vmatpush1.bf16.msra.mxu0 %v4278_v41  ;;  %v4367_v41 = vld [vmem:[#allocation5 + $0x7ec] ss:$28 sps:$4 sm:$0xff]  }
  0xbc   :  { %2513 = vmatpush1.bf16.msra.mxu1 %v4281_v42  ;;  %2352 = vmatprep.subr.bf16.mxu0 %v4286_v43  ;;  %v4362_v42 = vld [vmem:[#allocation5 + $0x818] ss:$28 sps:$4 sm:$0xff]   ;;  %v4365_v43 = vld [vmem:[#allocation5 + $0x7e8] ss:$28 sps:$4 sm:$0xff]  }
  0xbd   :  { %2514 = vmatprep.subr.bf16.mxu1 %v4289_v44  ;;  %v4370_v44 = vld [vmem:[#allocation5 + $0x854] ss:$28 sps:$4 sm:$0xff]  }
  0xbf   :  { %2353 = vmatpush1.bf16.msra.mxu0 %v4284_v45  ;;  %v4373_v45 = vld [vmem:[#allocation5 + $0x824] ss:$28 sps:$4 sm:$0xff]  }
  0xc0   :  { %2515 = vmatpush1.bf16.msra.mxu1 %v4287_v46  ;;  %2354 = vmatprep.subr.bf16.mxu0 %v4292_v47  ;;  %v4368_v46 = vld [vmem:[#allocation5 + $0x850] ss:$28 sps:$4 sm:$0xff]   ;;  %v4371_v47 = vld [vmem:[#allocation5 + $0x820] ss:$28 sps:$4 sm:$0xff]  }
  0xc1   :  { %2516 = vmatprep.subr.bf16.mxu1 %v4295_v48  ;;  %v4376_v48 = vld [vmem:[#allocation5 + $0x88c] ss:$28 sps:$4 sm:$0xff]  }
  0xc3   :  { %2355 = vmatpush1.bf16.msra.mxu0 %v4290_v49  ;;  %v4379_v49 = vld [vmem:[#allocation5 + $0x85c] ss:$28 sps:$4 sm:$0xff]  }
  0xc4   :  { %2517 = vmatpush1.bf16.msra.mxu1 %v4293_v50  ;;  %2356 = vmatprep.subr.bf16.mxu0 %v4298_v52  ;;  %v4374_v50 = vld [vmem:[#allocation5 + $0x888] ss:$28 sps:$4 sm:$0xff]   ;;  %v4377_v52 = vld [vmem:[#allocation5 + $0x858] ss:$28 sps:$4 sm:$0xff]  }
  0xc5   :  { %2518 = vmatprep.subr.bf16.mxu1 %v4301_v53  ;;  %v4382_v53 = vld [vmem:[#allocation5 + $0x8c4] ss:$28 sps:$4 sm:$0xff]  }
  0xc7   :  { %2357 = vmatpush1.bf16.msra.mxu0 %v4296_v54  ;;  %v4385_v54 = vld [vmem:[#allocation5 + $0x894] ss:$28 sps:$4 sm:$0xff]  }
  0xc8   :  { %2519 = vmatpush1.bf16.msra.mxu1 %v4299_v55  ;;  %2358 = vmatprep.subr.bf16.mxu0 %v4304_v56  ;;  %v4380_v55 = vld [vmem:[#allocation5 + $0x8c0] ss:$28 sps:$4 sm:$0xff]   ;;  %v4383_v56 = vld [vmem:[#allocation5 + $0x890] ss:$28 sps:$4 sm:$0xff]  }
  0xc9   :  { %2520 = vmatprep.subr.bf16.mxu1 %v4307_v57  ;;  %v4388_v57 = vld [vmem:[#allocation5 + $0x8fc] ss:$28 sps:$4 sm:$0xff]  }
  0xcb   :  { %2359 = vmatpush1.bf16.msra.mxu0 %v4302_v58  ;;  %v4391_v58 = vld [vmem:[#allocation5 + $0x8cc] ss:$28 sps:$4 sm:$0xff]  }
  0xcc   :  { %2521 = vmatpush1.bf16.msra.mxu1 %v4305_v59  ;;  %2360 = vmatprep.subr.bf16.mxu0 %v4310_v60  ;;  %v4386_v59 = vld [vmem:[#allocation5 + $0x8f8] ss:$28 sps:$4 sm:$0xff]   ;;  %v4389_v60 = vld [vmem:[#allocation5 + $0x8c8] ss:$28 sps:$4 sm:$0xff]  }
  0xcd   :  { %2522 = vmatprep.subr.bf16.mxu1 %v4313_v61  ;;  %v4394_v61 = vld [vmem:[#allocation5 + $0x934] ss:$28 sps:$4 sm:$0xff]  }
  0xcf   :  { %2361 = vmatpush1.bf16.msra.mxu0 %v4308_v62  ;;  %v4397_v62 = vld [vmem:[#allocation5 + $0x904] ss:$28 sps:$4 sm:$0xff]  }
  0xd0   :  { %2523 = vmatpush1.bf16.msra.mxu1 %v4311_v63  ;;  %2362 = vmatprep.subr.bf16.mxu0 %v4316_v1  ;;  %v4392_v63 = vld [vmem:[#allocation5 + $0x930] ss:$28 sps:$4 sm:$0xff]   ;;  %v4395_v1 = vld [vmem:[#allocation5 + $0x900] ss:$28 sps:$4 sm:$0xff]  }
  0xd1   :  { %2524 = vmatprep.subr.bf16.mxu1 %v4319_v2  ;;  %v4400_v2 = vld [vmem:[#allocation5 + $0x96c] ss:$28 sps:$4 sm:$0xff]  }
  0xd3   :  { %2363 = vmatpush1.bf16.msra.mxu0 %v4314_v3  ;;  %v4403_v3 = vld [vmem:[#allocation5 + $0x93c] ss:$28 sps:$4 sm:$0xff]  }
  0xd4   :  { %2525 = vmatpush1.bf16.msra.mxu1 %v4317_v4  ;;  %2364 = vmatprep.subr.bf16.mxu0 %v4322_v5  ;;  %v4398_v4 = vld [vmem:[#allocation5 + $0x968] ss:$28 sps:$4 sm:$0xff]   ;;  %v4401_v5 = vld [vmem:[#allocation5 + $0x938] ss:$28 sps:$4 sm:$0xff]  }
  0xd5   :  { %2526 = vmatprep.subr.bf16.mxu1 %v4325_v6  ;;  %v4406_v6 = vld [vmem:[#allocation5 + $0x9a4] ss:$28 sps:$4 sm:$0xff]  }
  0xd7   :  { %2365 = vmatpush1.bf16.msra.mxu0 %v4320_v7  ;;  %v4409_v7 = vld [vmem:[#allocation5 + $0x974] ss:$28 sps:$4 sm:$0xff]  }
  0xd8   :  { %2527 = vmatpush1.bf16.msra.mxu1 %v4323_v8  ;;  %2366 = vmatprep.subr.bf16.mxu0 %v4328_v11  ;;  %v4404_v8 = vld [vmem:[#allocation5 + $0x9a0] ss:$28 sps:$4 sm:$0xff]   ;;  %v4407_v11 = vld [vmem:[#allocation5 + $0x970] ss:$28 sps:$4 sm:$0xff]  }
  0xd9   :  { %2528 = vmatprep.subr.bf16.mxu1 %v4331_v12  ;;  %v4412_v12 = vld [vmem:[#allocation5 + $0x9dc] ss:$28 sps:$4 sm:$0xff]  }
  0xdb   :  { %2367 = vmatpush1.bf16.msra.mxu0 %v4326_v13  ;;  %v4415_v13 = vld [vmem:[#allocation5 + $0x9ac] ss:$28 sps:$4 sm:$0xff]  }
  0xdc   :  { %2529 = vmatpush1.bf16.msra.mxu1 %v4329_v15  ;;  %2377 = vmatprep.subr.bf16.mxu0 %v4334_v16  ;;  %v4413_v15 = vld [vmem:[#allocation5 + $0x9a8] ss:$28 sps:$4 sm:$0xff]   ;;  %v4418_v16 = vld [vmem:[#allocation5 + $0xa14] ss:$28 sps:$4 sm:$0xff]  }
  0xdd   :  { %2530 = vmatprep.subr.bf16.mxu1 %v4337_v17  ;;  %v4421_v17 = vld [vmem:[#allocation5 + $0x9e4] ss:$28 sps:$4 sm:$0xff]  }
  0xde   :  { %2369 = vmatmul.mubr.bf16.vlgmr.msra.gmra.mrb[0].mxu0 %v4939_v18 }
  0xdf   :  { %2378 = vmatpush1.bf16.msra.mxu0 %v4332_v19  ;;  %2409 = vmatprep.mubr.bf16.mxu0 %v4941_v24  ;;  %v4416_v19 = vld [vmem:[#allocation5 + $0xa10] ss:$28 sps:$4 sm:$0xff]  }
  0xe0   :  { %2531 = vmatpush1.bf16.msra.mxu1 %v4335_v20  ;;  %2379 = vmatprep.subr.bf16.mxu0 %v4340_v21  ;;  %v4419_v20 = vld [vmem:[#allocation5 + $0x9e0] ss:$28 sps:$4 sm:$0xff]   ;;  %v4424_v21 = vld [vmem:[#allocation5 + $0xa4c] ss:$28 sps:$4 sm:$0xff]  }
  0xe1   :  { %2541 = vmatprep.subr.bf16.mxu1 %v4343_v23  ;;  %v4422_v23 = vld [vmem:[#allocation5 + $0xa48] ss:$28 sps:$4 sm:$0xff]  }
  0xe3   :  { %2380 = vmatpush1.bf16.msra.mxu0 %v4338_v25  ;;  %2533 = vmatmul.mubr.bf16.vlgmr.msra.gmra.mrb[4].mxu1 %v4939_v18  ;;  %v4425_v25 = vld [vmem:[#allocation5 + $0xa18] ss:$28 sps:$4 sm:$0xff]  }
  0xe4   :  { %2542 = vmatpush1.bf16.msra.mxu1 %v4341_v26  ;;  %2381 = vmatprep.subr.bf16.mxu0 %v4346_v27  ;;  %v88_v26 = vld [vmem:[#allocation2 + $0x20] sm:$0xff]  ;;  %v4433_v27 = vld [vmem:[#allocation5 + $0x14] ss:$28 sps:$4 sm:$0xff]  }
  0xe5   :  { %2543 = vmatprep.subr.bf16.mxu1 %v4349_v28  ;;  %2573 = vmatprep.mubr.bf16.mxu1 %v4941_v24  ;;  %v4430_v28 = vld [vmem:[#allocation5 + $0xa54] ss:$28 sps:$4 sm:$0xff]  }
  0xe7   :  { %2382 = vmatpush1.bf16.msra.mxu0 %v4344_v29  ;;  %v4947_v29 = vpack.c.bf16 %v88_v26, %v88_v26  ;;  %v4513_v26 = vld [vmem:[#allocation5 + $0x3d0] ss:$28 sps:$4 sm:$0xff]  }
  0xe8   :  { %2544 = vmatpush1.bf16.msra.mxu1 %v4347_v30  ;;  %2383 = vmatprep.subr.bf16.mxu0 %v4352_v31  ;;  %v4428_v30 = vld [vmem:[#allocation5 + $0xa50] ss:$28 sps:$4 sm:$0xff]  }
  0xe9   :  { %2545 = vmatprep.subr.bf16.mxu1 %v4355_v32  ;;  %v4431_v31 = vld [vmem:[#allocation5 + $0x10] ss:$28 sps:$4 sm:$0xff]  }
  0xea   :  { %v4436_v32 = vld [vmem:[#allocation5 + $0x4c] ss:$28 sps:$4 sm:$0xff]  }
  0xeb   :  { %2384 = vmatpush1.bf16.msra.mxu0 %v4350_v33  ;;  %v4442_v33 = vld [vmem:[#allocation5 + $0xa8c] ss:$28 sps:$4 sm:$0xff]  }
  0xec   :  { %2546 = vmatpush1.bf16.msra.mxu1 %v4353_v34  ;;  %2385 = vmatprep.subr.bf16.mxu0 %v4358_v35  ;;  %v4434_v34 = vld [vmem:[#allocation5 + $0x48] ss:$28 sps:$4 sm:$0xff]  }
  0xed   :  { %2547 = vmatprep.subr.bf16.mxu1 %v4361_v37  ;;  %v4439_v35 = vld [vmem:[#allocation5 + $0x84] ss:$28 sps:$4 sm:$0xff]  }
  0xee   :  { %v4440_v37 = vld [vmem:[#allocation5 + $0xa88] ss:$28 sps:$4 sm:$0xff]  }
  0xef   :  { %2386 = vmatpush1.bf16.msra.mxu0 %v4356_v38  ;;  %v4467_v38 = vld [vmem:[#allocation5 + $0x1d8] ss:$28 sps:$4 sm:$0xff]  }
  0xf0   :  { %2548 = vmatpush1.bf16.msra.mxu1 %v4359_v39  ;;  %2387 = vmatprep.subr.bf16.mxu0 %v4364_v40  ;;  %v4437_v39 = vld [vmem:[#allocation5 + $0x80] ss:$28 sps:$4 sm:$0xff]  }
  0xf1   :  { %2549 = vmatprep.subr.bf16.mxu1 %v4367_v41  ;;  %v4445_v40 = vld [vmem:[#allocation5 + $0xbc] ss:$28 sps:$4 sm:$0xff]  }
  0xf2   :  { %v4443_v41 = vld [vmem:[#allocation5 + $0xb8] ss:$28 sps:$4 sm:$0xff]  }
  0xf3   :  { %2388 = vmatpush1.bf16.msra.mxu0 %v4362_v42  ;;  %v4448_v42 = vld [vmem:[#allocation5 + $0xf4] ss:$28 sps:$4 sm:$0xff]  }
  0xf4   :  { %2550 = vmatpush1.bf16.msra.mxu1 %v4365_v43  ;;  %2389 = vmatprep.subr.bf16.mxu0 %v4370_v44  ;;  %v4446_v43 = vld [vmem:[#allocation5 + $0xf0] ss:$28 sps:$4 sm:$0xff]  }
  0xf5   :  { %2551 = vmatprep.subr.bf16.mxu1 %v4373_v45  ;;  %v4451_v44 = vld [vmem:[#allocation5 + $0x12c] ss:$28 sps:$4 sm:$0xff]   ;;  %v4468_v45 = vld [vmem:[#allocation5 + $0x18] ss:$28 sps:$4 sm:$0xff]  }
  0xf7   :  { %2390 = vmatpush1.bf16.msra.mxu0 %v4368_v46  ;;  %v4472_v46 = vld [vmem:[#allocation5 + $0x210] ss:$28 sps:$4 sm:$0xff]  }
  0xf8   :  { %2552 = vmatpush1.bf16.msra.mxu1 %v4371_v47  ;;  %2391 = vmatprep.subr.bf16.mxu0 %v4376_v48  ;;  %v4449_v47 = vld [vmem:[#allocation5 + $0x128] ss:$28 sps:$4 sm:$0xff]  }
  0xf9   :  { %2553 = vmatprep.subr.bf16.mxu1 %v4379_v49  ;;  %v4454_v48 = vld [vmem:[#allocation5 + $0x164] ss:$28 sps:$4 sm:$0xff]   ;;  %v4473_v49 = vld [vmem:[#allocation5 + $0x50] ss:$28 sps:$4 sm:$0xff]  }
  0xfb   :  { %2392 = vmatpush1.bf16.msra.mxu0 %v4374_v50  ;;  %v4477_v50 = vld [vmem:[#allocation5 + $0x248] ss:$28 sps:$4 sm:$0xff]  }
  0xfc   :  { %2554 = vmatpush1.bf16.msra.mxu1 %v4377_v52  ;;  %2393 = vmatprep.subr.bf16.mxu0 %v4382_v53  ;;  %v4452_v52 = vld [vmem:[#allocation5 + $0x160] ss:$28 sps:$4 sm:$0xff]  }
  0xfd   :  { %2555 = vmatprep.subr.bf16.mxu1 %v4385_v54  ;;  %v4457_v53 = vld [vmem:[#allocation5 + $0x19c] ss:$28 sps:$4 sm:$0xff]   ;;  %v4478_v54 = vld [vmem:[#allocation5 + $0x88] ss:$28 sps:$4 sm:$0xff]  }
  0xff   :  { %2394 = vmatpush1.bf16.msra.mxu0 %v4380_v55  ;;  %v4482_v55 = vld [vmem:[#allocation5 + $0x280] ss:$28 sps:$4 sm:$0xff]  }
 0x100   :  { %2556 = vmatpush1.bf16.msra.mxu1 %v4383_v56  ;;  %2395 = vmatprep.subr.bf16.mxu0 %v4388_v57  ;;  %v4455_v56 = vld [vmem:[#allocation5 + $0x198] ss:$28 sps:$4 sm:$0xff]  }
 0x101   :  { %2557 = vmatprep.subr.bf16.mxu1 %v4391_v58  ;;  %v4460_v58 = vld [vmem:[#allocation5 + $0x1d4] ss:$28 sps:$4 sm:$0xff]  }
 0x103   :  { %2396 = vmatpush1.bf16.msra.mxu0 %v4386_v59  ;;  %v4483_v59 = vld [vmem:[#allocation5 + $0xc0] ss:$28 sps:$4 sm:$0xff]  }
 0x104   :  { %2558 = vmatpush1.bf16.msra.mxu1 %v4389_v60  ;;  %2397 = vmatprep.subr.bf16.mxu0 %v4394_v61 }
 0x105   :  { %2559 = vmatprep.subr.bf16.mxu1 %v4397_v62 }
 0x107   :  { %2398 = vmatpush1.bf16.msra.mxu0 %v4392_v63  ;;  %v4458_v63 = vld [vmem:[#allocation5 + $0x1d0] ss:$28 sps:$4 sm:$0xff]  }
 0x108   :  { %2560 = vmatpush1.bf16.msra.mxu1 %v4395_v1  ;;  %2399 = vmatprep.subr.bf16.mxu0 %v4400_v2  ;;  %v4463_v1 = vld [vmem:[#allocation5 + $0x20c] ss:$28 sps:$4 sm:$0xff]   ;;  %v4488_v2 = vld [vmem:[#allocation5 + $0xf8] ss:$28 sps:$4 sm:$0xff]  }
 0x109   :  { %2561 = vmatprep.subr.bf16.mxu1 %v4403_v3  ;;  %v4492_v3 = vld [vmem:[#allocation5 + $0x2f0] ss:$28 sps:$4 sm:$0xff]  }
 0x10b   :  { %2400 = vmatpush1.bf16.msra.mxu0 %v4398_v4  ;;  %v4461_v4 = vld [vmem:[#allocation5 + $0x208] ss:$28 sps:$4 sm:$0xff]  }
 0x10c   :  { %2562 = vmatpush1.bf16.msra.mxu1 %v4401_v5  ;;  %2401 = vmatprep.subr.bf16.mxu0 %v4406_v6  ;;  %v4466_v5 = vld [vmem:[#allocation5 + $0x244] ss:$28 sps:$4 sm:$0xff]   ;;  %v4493_v6 = vld [vmem:[#allocation5 + $0x130] ss:$28 sps:$4 sm:$0xff]  }
 0x10d   :  { %2563 = vmatprep.subr.bf16.mxu1 %v4409_v7  ;;  %v4497_v7 = vld [vmem:[#allocation5 + $0x328] ss:$28 sps:$4 sm:$0xff]  }
 0x10f   :  { %2402 = vmatpush1.bf16.msra.mxu0 %v4404_v8  ;;  %v4464_v8 = vld [vmem:[#allocation5 + $0x240] ss:$28 sps:$4 sm:$0xff]  }
 0x110   :  { %2564 = vmatpush1.bf16.msra.mxu1 %v4407_v11  ;;  %2403 = vmatprep.subr.bf16.mxu0 %v4412_v12  ;;  %v4471_v11 = vld [vmem:[#allocation5 + $0x27c] ss:$28 sps:$4 sm:$0xff]   ;;  %v4498_v12 = vld [vmem:[#allocation5 + $0x168] ss:$28 sps:$4 sm:$0xff]  }
 0x111   :  { %2565 = vmatprep.subr.bf16.mxu1 %v4415_v13  ;;  %v4502_v13 = vld [vmem:[#allocation5 + $0x360] ss:$28 sps:$4 sm:$0xff]  }
 0x113   :  { %2404 = vmatpush1.bf16.msra.mxu0 %v4410_v14  ;;  %v4469_v14 = vld [vmem:[#allocation5 + $0x278] ss:$28 sps:$4 sm:$0xff]  }
 0x114   :  { %2566 = vmatpush1.bf16.msra.mxu1 %v4413_v15  ;;  %2405 = vmatprep.subr.bf16.mxu0 %v4418_v16  ;;  %v4476_v15 = vld [vmem:[#allocation5 + $0x2b4] ss:$28 sps:$4 sm:$0xff]   ;;  %v4503_v16 = vld [vmem:[#allocation5 + $0x1a0] ss:$28 sps:$4 sm:$0xff]  }
 0x115   :  { %2567 = vmatprep.subr.bf16.mxu1 %v4421_v17  ;;  %v4507_v17 = vld [vmem:[#allocation5 + $0x558] ss:$28 sps:$4 sm:$0xff]  }
 0x117   :  { %2406 = vmatpush1.bf16.msra.mxu0 %v4416_v19  ;;  %v4474_v19 = vld [vmem:[#allocation5 + $0x2b0] ss:$28 sps:$4 sm:$0xff]  }
 0x118   :  { %2568 = vmatpush1.bf16.msra.mxu1 %v4419_v20  ;;  %2407 = vmatprep.subr.bf16.mxu0 %v4424_v21  ;;  %v4481_v20 = vld [vmem:[#allocation5 + $0x2ec] ss:$28 sps:$4 sm:$0xff]   ;;  %v4508_v21 = vld [vmem:[#allocation5 + $0x398] ss:$28 sps:$4 sm:$0xff]  }
 0x119   :  { %2569 = vmatprep.subr.bf16.mxu1 %v4427_v22  ;;  %v4512_v22 = vld [vmem:[#allocation5 + $0x590] ss:$28 sps:$4 sm:$0xff]  }
 0x11b   :  { %2408 = vmatpush1.bf16.msra.mxu0 %v4422_v23  ;;  %v4479_v23 = vld [vmem:[#allocation5 + $0x2e8] ss:$28 sps:$4 sm:$0xff]  }
 0x11c   :  { %2570 = vmatpush1.bf16.msra.mxu1 %v4425_v25  ;;  %2623 = vmatprep.subr.bf16.mxu0 %v4433_v27  ;;  %v4486_v25 = vld [vmem:[#allocation5 + $0x324] ss:$28 sps:$4 sm:$0xff]  }
 0x11d   :  { %2571 = vmatprep.subr.bf16.mxu1 %v4430_v28  ;;  %v4517_v27 = vld [vmem:[#allocation5 + $0x5c8] ss:$28 sps:$4 sm:$0xff]   ;;  %v4484_v28 = vld [vmem:[#allocation5 + $0x320] ss:$28 sps:$4 sm:$0xff]  }
 0x11e   :  { %2410 = vmatmul.mubr.bf16.vlgmr.msra.gmra.mrb[0].mxu0 %v4947_v29 }
 0x11f   :  { %2624 = vmatpush1.bf16.msra.mxu0 %v4431_v31  ;;  %2655 = vmatprep.mubr.bf16.mxu0 %v4927_v51  ;;  %v4518_v31 = vld [vmem:[#allocation5 + $0x408] ss:$28 sps:$4 sm:$0xff]  }
 0x120   :  { %2572 = vmatpush1.bf16.msra.mxu1 %v4428_v30  ;;  %2625 = vmatprep.subr.bf16.mxu0 %v4436_v32  ;;  %v4491_v30 = vld [vmem:[#allocation5 + $0x35c] ss:$28 sps:$4 sm:$0xff]  }
 0x121   :  { %2582 = vmatprep.subr.bf16.mxu1 %v4442_v33  ;;  %v4522_v32 = vld [vmem:[#allocation5 + $0x600] ss:$28 sps:$4 sm:$0xff]   ;;  %v4489_v33 = vld [vmem:[#allocation5 + $0x358] ss:$28 sps:$4 sm:$0xff]  }
 0x123   :  { %2574 = vmatmul.mubr.bf16.vlgmr.msra.gmra.mrb[4].mxu1 %v4947_v29  ;;  %2626 = vmatpush1.bf16.msra.mxu0 %v4434_v34  ;;  %v4496_v34 = vld [vmem:[#allocation5 + $0x394] ss:$28 sps:$4 sm:$0xff]  }
 0x124   :  { %2627 = vmatprep.subr.bf16.mxu0 %v4439_v35  ;;  %2583 = vmatpush1.bf16.msra.mxu1 %v4440_v37  ;;  %v4523_v35 = vld [vmem:[#allocation5 + $0x440] ss:$28 sps:$4 sm:$0xff]   ;;  %v4527_v37 = vld [vmem:[#allocation5 + $0x638] ss:$28 sps:$4 sm:$0xff]  }
 0x125   :  { %2614 = vmatprep.mubr.bf16.mxu1 %v4828_v0  ;;  %3939 = vmatprep.subr.bf16.mxu1 %v4467_v38  ;;  %v4494_v38 = vld [vmem:[#allocation5 + $0x390] ss:$28 sps:$4 sm:$0xff]  }
 0x127   :  { %2628 = vmatpush1.bf16.msra.mxu0 %v4437_v39  ;;  %v4501_v39 = vld [vmem:[#allocation5 + $0x3cc] ss:$28 sps:$4 sm:$0xff]  }
 0x128   :  { %2629 = vmatprep.subr.bf16.mxu0 %v4445_v40  ;;  %v4528_v40 = vld [vmem:[#allocation5 + $0x478] ss:$28 sps:$4 sm:$0xff]  }
 0x12b   :  { %2630 = vmatpush1.bf16.msra.mxu0 %v4443_v41  ;;  %v4532_v41 = vld [vmem:[#allocation5 + $0x670] ss:$28 sps:$4 sm:$0xff]  }
 0x12c   :  { %2631 = vmatprep.subr.bf16.mxu0 %v4448_v42  ;;  %v4499_v42 = vld [vmem:[#allocation5 + $0x3c8] ss:$28 sps:$4 sm:$0xff]  }
 0x12f   :  { %3885 = vmatmul.mubr.msk.bf16.vlgmr.msra.gmra.mrb[4].mxu1 %vm2291_vm0, %v4923_v10  ;;  %2632 = vmatpush1.bf16.msra.mxu0 %v4446_v43  ;;  %v4506_v43 = vld [vmem:[#allocation5 + $0x404] ss:$28 sps:$4 sm:$0xff]  }
 0x130   :  { %2633 = vmatprep.subr.bf16.mxu0 %v4451_v44  ;;  %3940 = vmatpush3.bf16.msra.mxu1 %v4468_v45  ;;  %v4533_v44 = vld [vmem:[#allocation5 + $0x4b0] ss:$28 sps:$4 sm:$0xff]   ;;  %v4537_v45 = vld [vmem:[#allocation5 + $0x6a8] ss:$28 sps:$4 sm:$0xff]  }
 0x131   :  { %3941 = vmatprep.subr.bf16.mxu1 %v4472_v46  ;;  %2819 = vmatprep.mubr.bf16.mxu1 %v4927_v51  ;;  %v4487_v51 = vld [vmem:[#allocation5 + $0x2b8] ss:$28 sps:$4 sm:$0xff]   ;;  %v4504_v46 = vld [vmem:[#allocation5 + $0x400] ss:$28 sps:$4 sm:$0xff]  }
 0x133   :  { %2634 = vmatpush1.bf16.msra.mxu0 %v4449_v47  ;;  %v4511_v47 = vld [vmem:[#allocation5 + $0x43c] ss:$28 sps:$4 sm:$0xff]  }
 0x134   :  { %2635 = vmatprep.subr.bf16.mxu0 %v4454_v48  ;;  %3942 = vmatpush3.bf16.msra.mxu1 %v4473_v49  ;;  %v4538_v48 = vld [vmem:[#allocation5 + $0x4e8] ss:$28 sps:$4 sm:$0xff]   ;;  %v4542_v49 = vld [vmem:[#allocation5 + $0x6e0] ss:$28 sps:$4 sm:$0xff]  }
 0x135   :  { %3943 = vmatprep.subr.bf16.mxu1 %v4477_v50  ;;  %v4509_v50 = vld [vmem:[#allocation5 + $0x438] ss:$28 sps:$4 sm:$0xff]  }
 0x136   :  { %v4956_v57 = vpop.f32.mrb[0].mxu1 }
 0x137   :  { %2636 = vmatpush1.bf16.msra.mxu0 %v4452_v52  ;;  %v4958_v60 = vpop.f32.mrb[1].mxu1  ;;  %v4543_v52 = vld [vmem:[#allocation5 + $0x520] ss:$28 sps:$4 sm:$0xff]  }
 0x138   :  { %2637 = vmatprep.subr.bf16.mxu0 %v4457_v53  ;;  %3944 = vmatpush3.bf16.msra.mxu1 %v4478_v54  ;;  %v2456_v61 = vpop.f32.mrb[2].mxu1  ;;  %v4547_v53 = vld [vmem:[#allocation5 + $0x8d8] ss:$28 sps:$4 sm:$0xff]   ;;  %v4521_v54 = vld [vmem:[#allocation5 + $0x4ac] ss:$28 sps:$4 sm:$0xff]  }
 0x139   :  { %3945 = vmatprep.subr.bf16.mxu1 %v4482_v55  ;;  %v2457_v62 = vpop.f32.mrb[3].mxu1  ;;  %v4548_v55 = vld [vmem:[#allocation5 + $0x718] ss:$28 sps:$4 sm:$0xff]   ;;  %v4553_v61 = vld [vmem:[#allocation5 + $0x750] ss:$28 sps:$4 sm:$0xff]  }
 0x13a   :  { %v4524_v62 = vld [vmem:[#allocation5 + $0x4e0] ss:$28 sps:$4 sm:$0xff]  }
 0x13b   :  { %2638 = vmatpush1.bf16.msra.mxu0 %v4455_v56  ;;  %v4552_v56 = vld [vmem:[#allocation5 + $0x910] ss:$28 sps:$4 sm:$0xff]  }
 0x13c   :  { %2639 = vmatprep.subr.bf16.mxu0 %v4460_v58  ;;  %3946 = vmatpush3.bf16.msra.mxu1 %v4483_v59  ;;  %v4519_v58 = vld [vmem:[#allocation5 + $0x4a8] ss:$28 sps:$4 sm:$0xff]  }
 0x13d   :  { %3947 = vmatprep.subr.bf16.mxu1 %v4487_v51  ;;  %v4526_v59 = vld [vmem:[#allocation5 + $0x4e4] ss:$28 sps:$4 sm:$0xff]  }
 0x13e   :  { %v4557_v51 = vld [vmem:[#allocation5 + $0x948] ss:$28 sps:$4 sm:$0xff]  }
 0x13f   :  { %2640 = vmatpush1.bf16.msra.mxu0 %v4458_v63  ;;  %v4531_v63 = vld [vmem:[#allocation5 + $0x51c] ss:$28 sps:$4 sm:$0xff]  }
 0x140   :  { %2641 = vmatprep.subr.bf16.mxu0 %v4463_v1  ;;  %3948 = vmatpush3.bf16.msra.mxu1 %v4488_v2  ;;  %v4558_v1 = vld [vmem:[#allocation5 + $0x788] ss:$28 sps:$4 sm:$0xff]   ;;  %v4562_v2 = vld [vmem:[#allocation5 + $0x980] ss:$28 sps:$4 sm:$0xff]  }
 0x141   :  { %3949 = vmatprep.subr.bf16.mxu1 %v4492_v3  ;;  %v4529_v3 = vld [vmem:[#allocation5 + $0x518] ss:$28 sps:$4 sm:$0xff]  }
 0x143   :  { %2642 = vmatpush1.bf16.msra.mxu0 %v4461_v4  ;;  %v4536_v4 = vld [vmem:[#allocation5 + $0x554] ss:$28 sps:$4 sm:$0xff]  }
 0x144   :  { %2643 = vmatprep.subr.bf16.mxu0 %v4466_v5  ;;  %3950 = vmatpush3.bf16.msra.mxu1 %v4493_v6  ;;  %v4563_v5 = vld [vmem:[#allocation5 + $0x7c0] ss:$28 sps:$4 sm:$0xff]   ;;  %v4567_v6 = vld [vmem:[#allocation5 + $0x9b8] ss:$28 sps:$4 sm:$0xff]  }
 0x145   :  { %3951 = vmatprep.subr.bf16.mxu1 %v4497_v7  ;;  %v4534_v7 = vld [vmem:[#allocation5 + $0x550] ss:$28 sps:$4 sm:$0xff]  }
 0x147   :  { %2644 = vmatpush1.bf16.msra.mxu0 %v4464_v8  ;;  %v4541_v8 = vld [vmem:[#allocation5 + $0x58c] ss:$28 sps:$4 sm:$0xff]  }
 0x148   :  { %2645 = vmatprep.subr.bf16.mxu0 %v4471_v11  ;;  %3952 = vmatpush3.bf16.msra.mxu1 %v4498_v12  ;;  %v4568_v11 = vld [vmem:[#allocation5 + $0x7f8] ss:$28 sps:$4 sm:$0xff]   ;;  %v4572_v12 = vld [vmem:[#allocation5 + $0x9f0] ss:$28 sps:$4 sm:$0xff]  }
 0x149   :  { %3953 = vmatprep.subr.bf16.mxu1 %v4502_v13  ;;  %v4539_v13 = vld [vmem:[#allocation5 + $0x588] ss:$28 sps:$4 sm:$0xff]  }
 0x14b   :  { %2646 = vmatpush1.bf16.msra.mxu0 %v4469_v14  ;;  %v4546_v14 = vld [vmem:[#allocation5 + $0x5c4] ss:$28 sps:$4 sm:$0xff]  }
 0x14c   :  { %2647 = vmatprep.subr.bf16.mxu0 %v4476_v15  ;;  %3954 = vmatpush3.bf16.msra.mxu1 %v4503_v16  ;;  %v4573_v15 = vld [vmem:[#allocation5 + $0x830] ss:$28 sps:$4 sm:$0xff]   ;;  %v4577_v16 = vld [vmem:[#allocation5 + $0xa28] ss:$28 sps:$4 sm:$0xff]  }
 0x14d   :  { %3961 = vmatprep.subr.bf16.mxu1 %v4507_v17  ;;  %v4544_v17 = vld [vmem:[#allocation5 + $0x5c0] ss:$28 sps:$4 sm:$0xff]  }
 0x14f   :  { %2648 = vmatpush1.bf16.msra.mxu0 %v4474_v19  ;;  %2820 = vmatmul.mubr.bf16.vlgmr.msra.gmra.mrb[8].mxu1 %v4931_v9  ;;  %v4551_v19 = vld [vmem:[#allocation5 + $0x5fc] ss:$28 sps:$4 sm:$0xff]  }
 0x150   :  { %2649 = vmatprep.subr.bf16.mxu0 %v4481_v20  ;;  %3962 = vmatpush3.bf16.msra.mxu1 %v4508_v21  ;;  %v4578_v20 = vld [vmem:[#allocation5 + $0x868] ss:$28 sps:$4 sm:$0xff]   ;;  %v4582_v21 = vld [vmem:[#allocation5 + $0xa60] ss:$28 sps:$4 sm:$0xff]  }
 0x151   :  { %3963 = vmatprep.subr.bf16.mxu1 %v4512_v22  ;;  %2859 = vmatprep.mubr.bf16.mxu1 %v4935_v36  ;;  %v4549_v22 = vld [vmem:[#allocation5 + $0x5f8] ss:$28 sps:$4 sm:$0xff]  }
 0x153   :  { %2650 = vmatpush1.bf16.msra.mxu0 %v4479_v23  ;;  %v4556_v23 = vld [vmem:[#allocation5 + $0x634] ss:$28 sps:$4 sm:$0xff]  }
 0x154   :  { %2651 = vmatprep.subr.bf16.mxu0 %v4486_v25  ;;  %3964 = vmatpush3.bf16.msra.mxu1 %v4513_v26  ;;  %v4583_v25 = vld [vmem:[#allocation5 + $0x8a0] ss:$28 sps:$4 sm:$0xff]   ;;  %v4554_v26 = vld [vmem:[#allocation5 + $0x630] ss:$28 sps:$4 sm:$0xff]  }
 0x155   :  { %3965 = vmatprep.subr.bf16.mxu1 %v4517_v27  ;;  %v4561_v27 = vld [vmem:[#allocation5 + $0x66c] ss:$28 sps:$4 sm:$0xff]  }
 0x157   :  { %2652 = vmatpush1.bf16.msra.mxu0 %v4484_v28  ;;  %v4590_v28 = vld [vmem:[#allocation5 + $0xa98] ss:$28 sps:$4 sm:$0xff]  }
 0x158   :  { %2653 = vmatprep.subr.bf16.mxu0 %v4491_v30  ;;  %3966 = vmatpush3.bf16.msra.mxu1 %v4518_v31  ;;  %v4829_v30 = vmov 0.0   ;;  %v4627_v31 = vld [vmem:[#allocation8 + $0x40] sm:$0xff]  }
 0x159   :  { %3967 = vmatprep.subr.bf16.mxu1 %v4522_v32  ;;  %v4559_v32 = vld [vmem:[#allocation5 + $0x668] ss:$28 sps:$4 sm:$0xff]  }
 0x15b   :  { %2654 = vmatpush1.bf16.msra.mxu0 %v4489_v33  ;;  %v4566_v33 = vld [vmem:[#allocation5 + $0x6a4] ss:$28 sps:$4 sm:$0xff]  }
 0x15c   :  { %2664 = vmatprep.subr.bf16.mxu0 %v4496_v34  ;;  %3968 = vmatpush3.bf16.msra.mxu1 %v4523_v35  ;;  %v4564_v34 = vld [vmem:[#allocation5 + $0x6a0] ss:$28 sps:$4 sm:$0xff]  }
 0x15d   :  { %3969 = vmatprep.subr.bf16.mxu1 %v4527_v37  ;;  %v4571_v35 = vld [vmem:[#allocation5 + $0x6dc] ss:$28 sps:$4 sm:$0xff]   ;;  %v4628_v37 = vld [vmem:[#allocation8] sm:$0xff]  }
 0x15e   :  { %2656 = vmatmul.mubr.bf16.vlgmr.msra.gmra.mrb[4].mxu0 %v4931_v9  ;;  %v4516_v9 = vld [vmem:[#allocation5 + $0x474] ss:$28 sps:$4 sm:$0xff]  }
 0x15f   :  { %2665 = vmatpush1.bf16.msra.mxu0 %v4494_v38  ;;  %2696 = vmatprep.mubr.bf16.mxu0 %v4935_v36  ;;  %v4514_v36 = vld [vmem:[#allocation5 + $0x470] ss:$28 sps:$4 sm:$0xff]  }
 0x160   :  { %2666 = vmatprep.subr.bf16.mxu0 %v4501_v39  ;;  %3970 = vmatpush3.bf16.msra.mxu1 %v4528_v40  ;;  %v4632_v38 = vld [vmem:[#allocation8 + $0x48] sm:$0xff]   ;;  %v4569_v39 = vld [vmem:[#allocation5 + $0x6d8] ss:$28 sps:$4 sm:$0xff]  }
 0x161   :  { %3971 = vmatprep.subr.bf16.mxu1 %v4532_v41  ;;  %v4576_v40 = vld [vmem:[#allocation5 + $0x714] ss:$28 sps:$4 sm:$0xff]   ;;  %v4633_v41 = vld [vmem:[#allocation8 + $0x8] sm:$0xff]  }
 0x163   :  { %2667 = vmatpush1.bf16.msra.mxu0 %v4499_v42  ;;  %v4634_v42 = vld [vmem:[#allocation8 + $0x50] sm:$0xff]  }
 0x164   :  { %2668 = vmatprep.subr.bf16.mxu0 %v4506_v43  ;;  %3972 = vmatpush3.bf16.msra.mxu1 %v4533_v44  ;;  %v4574_v43 = vld [vmem:[#allocation5 + $0x710] ss:$28 sps:$4 sm:$0xff]  }
 0x165   :  { %3973 = vmatprep.subr.bf16.mxu1 %v4537_v45  ;;  %v4581_v44 = vld [vmem:[#allocation5 + $0x74c] ss:$28 sps:$4 sm:$0xff]   ;;  %v4635_v45 = vld [vmem:[#allocation8 + $0x10] sm:$0xff]  }
 0x167   :  { %2669 = vmatpush1.bf16.msra.mxu0 %v4504_v46  ;;  %v4636_v46 = vld [vmem:[#allocation8 + $0x58] sm:$0xff]  }
 0x168   :  { %2670 = vmatprep.subr.bf16.mxu0 %v4511_v47  ;;  %3974 = vmatpush3.bf16.msra.mxu1 %v4538_v48  ;;  %v4579_v47 = vld [vmem:[#allocation5 + $0x748] ss:$28 sps:$4 sm:$0xff]  }
 0x169   :  { %3975 = vmatprep.subr.bf16.mxu1 %v4542_v49  ;;  %v4586_v48 = vld [vmem:[#allocation5 + $0x784] ss:$28 sps:$4 sm:$0xff]   ;;  %v4637_v49 = vld [vmem:[#allocation8 + $0x18] sm:$0xff]  }
 0x16b   :  { %2671 = vmatpush1.bf16.msra.mxu0 %v4509_v50  ;;  %v4638_v50 = vld [vmem:[#allocation8 + $0x60] sm:$0xff]  }
 0x16c   :  { %2672 = vmatprep.subr.bf16.mxu0 %v4516_v9  ;;  %3976 = vmatpush3.bf16.msra.mxu1 %v4543_v52  ;;  %v4584_v9 = vld [vmem:[#allocation5 + $0x780] ss:$28 sps:$4 sm:$0xff]  }
 0x16d   :  { %3983 = vmatprep.subr.bf16.mxu1 %v4547_v53  ;;  %v4589_v52 = vld [vmem:[#allocation5 + $0x7bc] ss:$28 sps:$4 sm:$0xff]   ;;  %v4639_v53 = vld [vmem:[#allocation8 + $0x20] sm:$0xff]  }
 0x16f   :  { %2673 = vmatpush1.bf16.msra.mxu0 %v4514_v36  ;;  %2860 = vmatmul.mubr.bf16.vlgmr.msra.gmra.mrb[12].mxu1 %v4939_v18  ;;  %v4640_v36 = vld [vmem:[#allocation8 + $0x68] sm:$0xff]  }
 0x170   :  { %2674 = vmatprep.subr.bf16.mxu0 %v4521_v54  ;;  %3984 = vmatpush3.bf16.msra.mxu1 %v4548_v55  ;;  %v4593_v54 = vld [vmem:[#allocation5 + $0x7f4] ss:$28 sps:$4 sm:$0xff]  }
 0x171   :  { %3985 = vmatprep.subr.bf16.mxu1 %v4552_v56  ;;  %2899 = vmatprep.mubr.bf16.mxu1 %v4941_v24  ;;  %v4642_v55 = vld [vmem:[#allocation8 + $0x70] sm:$0xff]  }
 0x172   :  { %v4591_v56 = vld [vmem:[#allocation5 + $0x7f0] ss:$28 sps:$4 sm:$0xff]  }
 0x173   :  { %2675 = vmatpush1.bf16.msra.mxu0 %v4519_v58  ;;  %v4596_v58 = vld [vmem:[#allocation5 + $0x82c] ss:$28 sps:$4 sm:$0xff]  }
 0x174   :  { %2676 = vmatprep.subr.bf16.mxu0 %v4526_v59  ;;  %3986 = vmatpush3.bf16.msra.mxu1 %v4553_v61  ;;  %v4643_v59 = vld [vmem:[#allocation8 + $0x30] sm:$0xff]   ;;  %v4644_v61 = vld [vmem:[#allocation8 + $0x78] sm:$0xff]  }
 0x175   :  { %3987 = vmatprep.subr.bf16.mxu1 %v4557_v51  ;;  %v4594_v51 = vld [vmem:[#allocation5 + $0x828] ss:$28 sps:$4 sm:$0xff]  }
 0x177   :  { %2677 = vmatpush1.bf16.msra.mxu0 %v4524_v62  ;;  %v4599_v62 = vld [vmem:[#allocation5 + $0x864] ss:$28 sps:$4 sm:$0xff]  }
 0x178   :  { %2678 = vmatprep.subr.bf16.mxu0 %v4531_v63  ;;  %3988 = vmatpush3.bf16.msra.mxu1 %v4558_v1  ;;  %v4645_v63 = vld [vmem:[#allocation8 + $0x38] sm:$0xff]   ;;  %v4646_v1 = vld [vmem:[#allocation8 + $0xc0] sm:$0xff]  }
 0x179   :  { %3989 = vmatprep.subr.bf16.mxu1 %v4562_v2  ;;  %v4597_v2 = vld [vmem:[#allocation5 + $0x860] ss:$28 sps:$4 sm:$0xff]  }
 0x17b   :  { %2679 = vmatpush1.bf16.msra.mxu0 %v4529_v3  ;;  %v4602_v3 = vld [vmem:[#allocation5 + $0x89c] ss:$28 sps:$4 sm:$0xff]  }
 0x17c   :  { %2680 = vmatprep.subr.bf16.mxu0 %v4536_v4  ;;  %3990 = vmatpush3.bf16.msra.mxu1 %v4563_v5  ;;  %v4600_v4 = vld [vmem:[#allocation5 + $0x898] ss:$28 sps:$4 sm:$0xff]  }
 0x17d   :  { %3991 = vmatprep.subr.bf16.mxu1 %v4567_v6  ;;  %v4605_v5 = vld [vmem:[#allocation5 + $0x8d4] ss:$28 sps:$4 sm:$0xff]  }
 0x17e   :  { %v4603_v6 = vld [vmem:[#allocation5 + $0x8d0] ss:$28 sps:$4 sm:$0xff]  }
 0x17f   :  { %2681 = vmatpush1.bf16.msra.mxu0 %v4534_v7  ;;  %v4608_v7 = vld [vmem:[#allocation5 + $0x90c] ss:$28 sps:$4 sm:$0xff]  }
 0x180   :  { %2682 = vmatprep.subr.bf16.mxu0 %v4541_v8  ;;  %3992 = vmatpush3.bf16.msra.mxu1 %v4568_v11  ;;  %v4606_v8 = vld [vmem:[#allocation5 + $0x908] ss:$28 sps:$4 sm:$0xff]  }
 0x181   :  { %3993 = vmatprep.subr.bf16.mxu1 %v4572_v12  ;;  %v4611_v11 = vld [vmem:[#allocation5 + $0x944] ss:$28 sps:$4 sm:$0xff]  }
 0x182   :  { %v4609_v12 = vld [vmem:[#allocation5 + $0x940] ss:$28 sps:$4 sm:$0xff]  }
 0x183   :  { %2683 = vmatpush1.bf16.msra.mxu0 %v4539_v13  ;;  %v4614_v13 = vld [vmem:[#allocation5 + $0x97c] ss:$28 sps:$4 sm:$0xff]  }
 0x184   :  { %2684 = vmatprep.subr.bf16.mxu0 %v4546_v14  ;;  %3994 = vmatpush3.bf16.msra.mxu1 %v4573_v15  ;;  %v4612_v14 = vld [vmem:[#allocation5 + $0x978] ss:$28 sps:$4 sm:$0xff]  }
 0x185   :  { %3995 = vmatprep.subr.bf16.mxu1 %v4577_v16  ;;  %v4617_v15 = vld [vmem:[#allocation5 + $0x9b4] ss:$28 sps:$4 sm:$0xff]  }
 0x186   :  { %v4615_v16 = vld [vmem:[#allocation5 + $0x9b0] ss:$28 sps:$4 sm:$0xff]  }
 0x187   :  { %2685 = vmatpush1.bf16.msra.mxu0 %v4544_v17  ;;  %v4620_v17 = vld [vmem:[#allocation5 + $0x9ec] ss:$28 sps:$4 sm:$0xff]  }
 0x188   :  { %2686 = vmatprep.subr.bf16.mxu0 %v4551_v19  ;;  %3996 = vmatpush3.bf16.msra.mxu1 %v4578_v20  ;;  %v4618_v19 = vld [vmem:[#allocation5 + $0x9e8] ss:$28 sps:$4 sm:$0xff]  }
 0x189   :  { %3997 = vmatprep.subr.bf16.mxu1 %v4582_v21  ;;  %v4623_v20 = vld [vmem:[#allocation5 + $0xa24] ss:$28 sps:$4 sm:$0xff]  }
 0x18a   :  { %v4621_v21 = vld [vmem:[#allocation5 + $0xa20] ss:$28 sps:$4 sm:$0xff]  }
 0x18b   :  { %2687 = vmatpush1.bf16.msra.mxu0 %v4549_v22  ;;  %v4626_v22 = vld [vmem:[#allocation5 + $0xa5c] ss:$28 sps:$4 sm:$0xff]  }
 0x18c   :  { %2688 = vmatprep.subr.bf16.mxu0 %v4556_v23  ;;  %3998 = vmatpush3.bf16.msra.mxu1 %v4583_v25  ;;  %v4624_v23 = vld [vmem:[#allocation5 + $0xa58] ss:$28 sps:$4 sm:$0xff]  }
 0x18d   :  { %4075 = vmatprep.subr.bf16.mxu1 %v4829_v30  ;;  %v4631_v25 = vld [vmem:[#allocation5 + $0xa94] ss:$28 sps:$4 sm:$0xff]  }
 0x18f   :  { %2689 = vmatpush1.bf16.msra.mxu0 %v4554_v26  ;;  %2900 = vmatmul.mubr.bf16.vlgmr.msra.gmra.mrb[16].mxu1 %v4947_v29  ;;  %v4629_v26 = vld [vmem:[#allocation5 + $0xa90] ss:$28 sps:$4 sm:$0xff]  }
 0x190   :  { %2690 = vmatprep.subr.bf16.mxu0 %v4561_v27  ;;  %4076 = vmatpush3.bf16.msra.mxu1 %v4590_v28  ;;  %v492_v27 = vlaneseq }
 0x191   :  { %4077 = vmatprep.mubr.msk.bf16.mxu1 %vm4830_vm1, %v4829_v30  ;;  %4007 = vmatprep.subr.bf16.mxu1 %v4627_v31 }
 0x192   :  { %v4977_v28 = vshrl.u32 %v492_v27, 7  ;;  %v4673_v27 = vld [vmem:[#allocation8 + $0x168] sm:$0xff]  }
 0x193   :  { %2691 = vmatpush1.bf16.msra.mxu0 %v4559_v32  ;;  %v4982_v32 = vld [vmem:[#allocation7] sm:$0x7f] }
 0x194   :  { %2692 = vmatprep.subr.bf16.mxu0 %v4566_v33  ;;  %v494_v31 = vsub.s32 0, %v4977_v28  ;;  %v498_v33 = vsub.s32 1, %v4977_v28 }
 0x197   :  { %2693 = vmatpush1.bf16.msra.mxu0 %v4564_v34  ;;  %4078 = vmatmul.mubr.msk.bf16.vlgmr.msra.gmra.mrb[20].mxu1 %vm2291_vm0, %v4923_v10  ;;  %v4662_v34 = vld [vmem:[#allocation8 + $0x180] sm:$0xff]  }
 0x198   :  { %2694 = vmatprep.subr.bf16.mxu0 %v4571_v35  ;;  %4008 = vmatpush3.bf16.msra.mxu1 %v4628_v37 }
 0x199   :  { %4009 = vmatprep.subr.bf16.mxu1 %v4632_v38 }
 0x19b   :  { %2695 = vmatpush1.bf16.msra.mxu0 %v4569_v39 }
 0x19c   :  { %2705 = vmatprep.subr.bf16.mxu0 %v4576_v40  ;;  %4010 = vmatpush3.bf16.msra.mxu1 %v4633_v41 }
 0x19d   :  { %4011 = vmatprep.subr.bf16.mxu1 %v4634_v42 }
 0x19e   :  { %2697 = vmatmul.mubr.bf16.vlgmr.msra.gmra.mrb[4].mxu0 %v4939_v18  ;;  %v4587_v18 = vld [vmem:[#allocation5 + $0x7b8] ss:$28 sps:$4 sm:$0xff]  }
 0x19f   :  { %2706 = vmatpush1.bf16.msra.mxu0 %v4574_v43  ;;  %2737 = vmatprep.mubr.bf16.mxu0 %v4941_v24  ;;  %v4641_v24 = vld [vmem:[#allocation8 + $0x28] sm:$0xff]  }
 0x1a0   :  { %2707 = vmatprep.subr.bf16.mxu0 %v4581_v44  ;;  %4012 = vmatpush3.bf16.msra.mxu1 %v4635_v45 }
 0x1a1   :  { %4013 = vmatprep.subr.bf16.mxu1 %v4636_v46 }
 0x1a3   :  { %2708 = vmatpush1.bf16.msra.mxu0 %v4579_v47  ;;  %v4648_v47 = vld [vmem:[#allocation8 + $0xc8] sm:$0xff]  }
 0x1a4   :  { %2709 = vmatprep.subr.bf16.mxu0 %v4586_v48  ;;  %4014 = vmatpush3.bf16.msra.mxu1 %v4637_v49  ;;  %v506_v48 = vsub.s32 3, %v4977_v28  ;;  %v4649_v49 = vld [vmem:[#allocation8 + $0x88] sm:$0xff]  }
 0x1a5   :  { %4015 = vmatprep.subr.bf16.mxu1 %v4638_v50  ;;  %v4650_v50 = vld [vmem:[#allocation8 + $0xd0] sm:$0xff]  }
 0x1a7   :  { %2710 = vmatpush1.bf16.msra.mxu0 %v4584_v9  ;;  %v507_v9 = vrot.slane %v4982_v32, %v506_v48 }
 0x1a8   :  { %2711 = vmatprep.subr.bf16.mxu0 %v4589_v52  ;;  %4016 = vmatpush3.bf16.msra.mxu1 %v4639_v53 }
 0x1a9   :  { %4017 = vmatprep.subr.bf16.mxu1 %v4640_v36 }
 0x1ab   :  { %2712 = vmatpush1.bf16.msra.mxu0 %v4587_v18 }
 0x1ac   :  { %2713 = vmatprep.subr.bf16.mxu0 %v4593_v54  ;;  %4018 = vmatpush3.bf16.msra.mxu1 %v4641_v24  ;;  %v4653_v24 = vld [vmem:[#allocation8 + $0x98] sm:$0xff]  }
 0x1ad   :  { %4019 = vmatprep.subr.bf16.mxu1 %v4642_v55 }
 0x1af   :  { %2714 = vmatpush1.bf16.msra.mxu0 %v4591_v56  ;;  %v4654_v56 = vld [vmem:[#allocation8 + $0xe0] sm:$0xff]  }
 0x1b0   :  { %2715 = vmatprep.subr.bf16.mxu0 %v4596_v58  ;;  %4020 = vmatpush3.bf16.msra.mxu1 %v4643_v59  ;;  %v4655_v59 = vld [vmem:[#allocation8 + $0xa0] sm:$0xff]  }
 0x1b1   :  { %4021 = vmatprep.subr.bf16.mxu1 %v4644_v61  ;;  %v502_v61 = vsub.s32 2, %v4977_v28 }
 0x1b3   :  { %2716 = vmatpush1.bf16.msra.mxu0 %v4594_v51  ;;  %v4656_v51 = vld [vmem:[#allocation8 + $0xe8] sm:$0xff]  }
 0x1b4   :  { %2717 = vmatprep.subr.bf16.mxu0 %v4599_v62  ;;  %4022 = vmatpush3.bf16.msra.mxu1 %v4645_v63  ;;  %v4657_v62 = vld [vmem:[#allocation8 + $0xa8] sm:$0xff]   ;;  %v503_v63 = vrot.slane %v4982_v32, %v502_v61 }
 0x1b5   :  { %4029 = vmatprep.subr.bf16.mxu1 %v4646_v1  ;;  %v4658_v1 = vld [vmem:[#allocation8 + $0xf0] sm:$0xff]  }
 0x1b7   :  { %2718 = vmatpush1.bf16.msra.mxu0 %v4597_v2  ;;  %v4659_v2 = vld [vmem:[#allocation8 + $0xb0] sm:$0xff]  }
 0x1b8   :  { %2719 = vmatprep.subr.bf16.mxu0 %v4602_v3 }
 0x1bb   :  { %2720 = vmatpush1.bf16.msra.mxu0 %v4600_v4  ;;  %v4660_v4 = vld [vmem:[#allocation8 + $0xf8] sm:$0xff]  }
 0x1bc   :  { %2721 = vmatprep.subr.bf16.mxu0 %v4605_v5  ;;  %v4661_v5 = vld [vmem:[#allocation8 + $0xb8] sm:$0xff]  }
 0x1bf   :  { %2722 = vmatpush1.bf16.msra.mxu0 %v4603_v6 }
 0x1c0   :  { %2723 = vmatprep.subr.bf16.mxu0 %v4608_v7  ;;  %v4663_v7 = vld [vmem:[#allocation8 + $0x140] sm:$0xff]  }
 0x1c3   :  { %2724 = vmatpush1.bf16.msra.mxu0 %v4606_v8  ;;  %v4664_v8 = vld [vmem:[#allocation8 + $0x100] sm:$0xff]  }
 0x1c4   :  { %2725 = vmatprep.subr.bf16.mxu0 %v4611_v11 }
 0x1c7   :  { %2726 = vmatpush1.bf16.msra.mxu0 %v4609_v12  ;;  %v4665_v12 = vld [vmem:[#allocation8 + $0x148] sm:$0xff]  }
 0x1c8   :  { %2727 = vmatprep.subr.bf16.mxu0 %v4614_v13  ;;  %v4666_v13 = vld [vmem:[#allocation8 + $0x108] sm:$0xff]  }
 0x1cb   :  { %2728 = vmatpush1.bf16.msra.mxu0 %v4612_v14  ;;  %v4667_v14 = vld [vmem:[#allocation8 + $0x150] sm:$0xff]  }
 0x1cc   :  { %2729 = vmatprep.subr.bf16.mxu0 %v4617_v15  ;;  %v4668_v15 = vld [vmem:[#allocation8 + $0x110] sm:$0xff]  }
 0x1cf   :  { %2730 = vmatpush1.bf16.msra.mxu0 %v4615_v16 }
 0x1d0   :  { %2731 = vmatprep.subr.bf16.mxu0 %v4620_v17  ;;  %v4669_v17 = vld [vmem:[#allocation8 + $0x158] sm:$0xff]  }
 0x1d3   :  { %2732 = vmatpush1.bf16.msra.mxu0 %v4618_v19 }
 0x1d4   :  { %2733 = vmatprep.subr.bf16.mxu0 %v4623_v20 }
 0x1d7   :  { %2734 = vmatpush1.bf16.msra.mxu0 %v4621_v21 }
 0x1d8   :  { %2735 = vmatprep.subr.bf16.mxu0 %v4626_v22 }
 0x1db   :  { %2736 = vmatpush1.bf16.msra.mxu0 %v4624_v23  ;;  %v4670_v23 = vld [vmem:[#allocation8 + $0x118] sm:$0xff]  }
 0x1dc   :  { %2746 = vmatprep.subr.bf16.mxu0 %v4631_v25  ;;  %v4671_v25 = vld [vmem:[#allocation8 + $0x160] sm:$0xff]  }
 0x1de   :  { %2738 = vmatmul.mubr.bf16.vlgmr.msra.gmra.mrb[4].mxu0 %v4947_v29  ;;  %v495_v29 = vrot.slane %v4982_v32, %v494_v31  ;;  %v4674_v31 = vld [vmem:[#allocation8 + $0x128] sm:$0xff]  }
 0x1df   :  { %2747 = vmatpush1.bf16.msra.mxu0 %v4629_v26  ;;  %2778 = vmatprep.mubr.bf16.mxu0 %v4828_v0  ;;  %v499_v0 = vrot.slane %v4982_v32, %v498_v33  ;;  %v4672_v26 = vld [vmem:[#allocation8 + $0x120] sm:$0xff]   ;;  %v518_v33 = vsub.s32 6, %v4977_v28 }
 0x1e0   :  { %4081 = vmatprep.subr.bf16.mxu0 %v4829_v30 }
 0x1ea   :  { %3886 = vmatmul.mubr.msk.bf16.vlgmr.msra.gmra.mrb[4].mxu0 %vm2291_vm0, %v4923_v10 }
 0x1eb   :  { %4083 = vmatprep.mubr.msk.bf16.mxu0 %vm4830_vm1, %v4829_v30  ;;  %4082 = vmatpush3.bf16.msra.mxu0 %v4662_v34  ;;  %v4647_v30 = vld [vmem:[#allocation8 + $0x80] sm:$0xff]   ;;  %v4676_v34 = vld [vmem:[#allocation8 + $0x130] sm:$0xff]  }
 0x1f1   :  { %v2411_v35 = vpop.f32.mrb[0].mxu0 }
 0x1f2   :  { %v4087_v37 = vadd.f32 %v2411_v35, %v495_v29  ;;  %v2413_v38 = vpop.f32.mrb[1].mxu0  ;;  %v4675_v29 = vld [vmem:[#allocation8 + $0x170] sm:$0xff]   ;;  %v4677_v35 = vld [vmem:[#allocation8 + $0x178] sm:$0xff]  }
 0x1f3   :  { %v4089_v39 = vadd.f32 %v2413_v38, %v499_v0  ;;  %v2415_v10 = vpop.f32.mrb[2].mxu0  ;;  %v519_v0 = vrot.slane %v4982_v32, %v518_v33 }
 0x1f4   :  { %v4088_v40 = vadd.f32 %v4087_v37, %v4956_v57  ;;  %v2416_v41 = vpop.f32.mrb[3].mxu0  ;;  %v4651_v57 = vld [vmem:[#allocation8 + $0x90] sm:$0xff]  }
 0x1f5   :  { %v4090_v42 = vadd.f32 %v4089_v39, %v4958_v60  ;;  %v4652_v60 = vld [vmem:[#allocation8 + $0xd8] sm:$0xff]  }
 0x1f6   :  { %v2947_v43 = vmax.f32 %v4088_v40, 0.0  ;;  %v4678_v39 = vld [vmem:[#allocation8 + $0x138] sm:$0xff]  }
 0x1f7   :  { %v2948_v44 = vmax.f32 %v4090_v42, 0.0 }
 0x1f8   :  { %v2954_v46 = vpack.c.bf16 %v2947_v43, %v2947_v43 }
 0x1f9   :  { %v2955_v45 = vpack.c.bf16 %v2948_v44, %v2948_v44 }
 0x1fb   :  { %3395 = vmatprep.mubr.bf16.mxu1 %v2955_v45 }
 0x1fc   :  { %3396 = vmatmul.mubr.bf16.vlgmr.msra.gmra.mrb[24].mxu1 %v2954_v46 }
 0x1fd   :  { %4030 = vmatpush3.bf16.msra.mxu1 %v4647_v30 }
 0x1fe   :  { %4031 = vmatprep.subr.bf16.mxu1 %v4648_v47 }
 0x201   :  { %4032 = vmatpush3.bf16.msra.mxu1 %v4649_v49 }
 0x202   :  { %v2616_v52 = vpop.f32.mrb[4].mxu1  ;;  %4033 = vmatprep.subr.bf16.mxu1 %v4650_v50 }
 0x203   :  { %v2618_v53 = vpop.f32.mrb[5].mxu1  ;;  %v4091_v3 = vadd.f32 %v2616_v52, %v503_v63 }
 0x204   :  { %v4092_v36 = vadd.f32 %v2618_v53, %v507_v9  ;;  %v2620_v18 = vpop.f32.mrb[6].mxu1 }
 0x205   :  { %v2621_v54 = vpop.f32.mrb[7].mxu1  ;;  %4034 = vmatpush3.bf16.msra.mxu1 %v4651_v57  ;;  %v2949_v6 = vmax.f32 %v4091_v3, 0.0  ;;  %v514_v18 = vsub.s32 5, %v4977_v28 }
 0x206   :  { %v2950_v55 = vmax.f32 %v4092_v36, 0.0  ;;  %4035 = vmatprep.subr.bf16.mxu1 %v4652_v60  ;;  %v510_v36 = vsub.s32 4, %v4977_v28 }
 0x207   :  { %v2956_v11 = vpack.c.bf16 %v2949_v6, %v2949_v6 }
 0x208   :  { %v2957_v58 = vpack.c.bf16 %v2950_v55, %v2950_v55  ;;  %v511_v54 = vrot.slane %v4982_v32, %v510_v36 }
 0x209   :  { %4036 = vmatpush3.bf16.msra.mxu1 %v4653_v24  ;;  %v515_v24 = vrot.slane %v4982_v32, %v514_v18 }
 0x20a   :  { %3435 = vmatprep.mubr.bf16.mxu1 %v2957_v58  ;;  %4037 = vmatprep.subr.bf16.mxu1 %v4654_v56 }
 0x20d   :  { %4038 = vmatpush3.bf16.msra.mxu1 %v4655_v59 }
 0x20e   :  { %4039 = vmatprep.subr.bf16.mxu1 %v4656_v51 }
 0x211   :  { %4040 = vmatpush3.bf16.msra.mxu1 %v4657_v62 }
 0x212   :  { %4041 = vmatprep.subr.bf16.mxu1 %v4658_v1 }
 0x215   :  { %4042 = vmatpush3.bf16.msra.mxu1 %v4659_v2 }
 0x216   :  { %4043 = vmatprep.subr.bf16.mxu1 %v4660_v4 }
 0x219   :  { %4044 = vmatpush3.bf16.msra.mxu1 %v4661_v5 }
 0x21a   :  { %4051 = vmatprep.subr.bf16.mxu1 %v4663_v7  ;;  %v3888_v7 = vld [vmem:[#allocation10] ss:$0 sm:$0xff] }
 0x21c   :  { %3436 = vmatmul.mubr.bf16.vlgmr.msra.gmra.mrb[28].mxu1 %v2956_v11 }
 0x21d   :  { %4052 = vmatpush3.bf16.msra.mxu1 %v4664_v8 }
 0x21e   :  { %4053 = vmatprep.subr.bf16.mxu1 %v4665_v12 }
 0x221   :  { %4054 = vmatpush3.bf16.msra.mxu1 %v4666_v13 }
 0x222   :  { %v3955_v16 = vpop.f32.mrb[8].mxu1  ;;  %4055 = vmatprep.subr.bf16.mxu1 %v4667_v14 }
 0x223   :  { %v3956_v19 = vpop.f32.mrb[9].mxu1 }
 0x224   :  { %v3957_v20 = vadd.f32 %v3956_v19, %v3955_v16  ;;  %v3958_v21 = vpop.f32.mrb[10].mxu1 }
 0x225   :  { %v3959_v22 = vpop.f32.mrb[11].mxu1  ;;  %4056 = vmatpush3.bf16.msra.mxu1 %v4668_v15 }
 0x226   :  { %4057 = vmatprep.subr.bf16.mxu1 %v4669_v17  ;;  %v2822_v37 = vadd.f32 %v3957_v20, %v519_v0 }
 0x229   :  { %4058 = vmatpush3.bf16.msra.mxu1 %v4670_v23 }
 0x22a   :  { %4059 = vmatprep.subr.bf16.mxu1 %v4671_v25 }
 0x22d   :  { %4060 = vmatpush3.bf16.msra.mxu1 %v4672_v26 }
 0x22e   :  { %4061 = vmatprep.subr.bf16.mxu1 %v4673_v27 }
 0x231   :  { %4062 = vmatpush3.bf16.msra.mxu1 %v4674_v31 }
 0x232   :  { %4063 = vmatprep.subr.bf16.mxu1 %v4675_v29 }
 0x235   :  { %4064 = vmatpush3.bf16.msra.mxu1 %v4676_v34 }
 0x236   :  { %4065 = vmatprep.subr.bf16.mxu1 %v4677_v35 }
 0x239   :  { %4066 = vmatpush3.bf16.msra.mxu1 %v4678_v39 }
 0x242   :  { %v3977_v38 = vpop.f32.mrb[12].mxu1 }
 0x243   :  { %v3978_v10 = vpop.f32.mrb[13].mxu1 }
 0x244   :  { %v3979_v40 = vadd.f32 %v3978_v10, %v3977_v38  ;;  %v3980_v41 = vpop.f32.mrb[14].mxu1 }
 0x245   :  { %v3981_v42 = vpop.f32.mrb[15].mxu1 }
 0x246   :  { %v2862_v43 = vadd.f32 %v3979_v40, %v2822_v37 }
 0x262   :  { %v3999_v44 = vpop.f32.mrb[16].mxu1 }
 0x263   :  { %v4000_v45 = vpop.f32.mrb[17].mxu1 }
 0x264   :  { %v4001_v30 = vadd.f32 %v4000_v45, %v3999_v44  ;;  %v4002_v46 = vpop.f32.mrb[18].mxu1 }
 0x265   :  { %v4003_v47 = vpop.f32.mrb[19].mxu1 }
 0x266   :  { %v2902_v48 = vadd.f32 %v4001_v30, %v2862_v43 }
 0x26a   :  { %v2941_v49 = vpop.f32.mrb[20].mxu1 }
 0x26b   :  { %v2942_v50 = vadd.f32 %v2941_v49, %v2902_v48  ;;  %v4079_v9 = vpop.f32.mrb[21].mxu1 }
 0x26c   :  { %v2944_v57 = vpop.f32.mrb[22].mxu1 }
 0x26d   :  { %v2953_v52 = vmax.f32 %v2942_v50, 0.0  ;;  %v4080_v60 = vpop.f32.mrb[23].mxu1 }
 0x26f   :  { %v2960_v53 = vpack.c.bf16 %v2953_v52, %v2953_v52 }
 0x271   :  { %4084 = vmatmul.mubr.msk.bf16.vlgmr.msra.gmra.mrb[8].mxu0 %vm2291_vm0, %v2960_v53 }
 0x2bd   :  { %v2780_v55 = vpop.f32.mrb[4].mxu0 }
 0x2be   :  { %v4093_v56 = vadd.f32 %v2780_v55, %v511_v54  ;;  %v2782_v58 = vpop.f32.mrb[5].mxu0 }
 0x2bf   :  { %v4094_v59 = vadd.f32 %v2782_v58, %v515_v24  ;;  %v2784_v61 = vpop.f32.mrb[6].mxu0 }
 0x2c0   :  { %v2951_v51 = vmax.f32 %v4093_v56, 0.0  ;;  %v2785_v62 = vpop.f32.mrb[7].mxu0 }
 0x2c1   :  { %v2952_v63 = vmax.f32 %v4094_v59, 0.0 }
 0x2c2   :  { %v2958_v2 = vpack.c.bf16 %v2951_v51, %v2951_v51 }
 0x2c3   :  { %v2959_v1 = vpack.c.bf16 %v2952_v63, %v2952_v63 }
 0x2c5   :  { %3475 = vmatprep.mubr.bf16.mxu1 %v2959_v1 }
 0x2c6   :  { %3476 = vmatmul.mubr.bf16.vlgmr.msra.gmra.mrb[32].mxu1 %v2958_v2 }
 0x2cf   :  { %v4023_v3 = vpop.f32.mrb[24].mxu1 }
 0x2d0   :  { %v4024_v4 = vpop.f32.mrb[25].mxu1 }
 0x2d1   :  { %v4025_v5 = vadd.f32 %v4024_v4, %v4023_v3  ;;  %v4026_v28 = vpop.f32.mrb[26].mxu1 }
 0x2d2   :  { %v4027_v6 = vpop.f32.mrb[27].mxu1 }
 0x2d3   :  { %v3398_v11 = vadd.f32 %v4025_v5, %v3888_v7 }
 0x2ef   :  { %v4045_v8 = vpop.f32.mrb[28].mxu1 }
 0x2f0   :  { %v4046_v32 = vpop.f32.mrb[29].mxu1 }
 0x2f1   :  { %v4047_v12 = vadd.f32 %v4046_v32, %v4045_v8  ;;  %v4048_v13 = vpop.f32.mrb[30].mxu1 }
 0x2f2   :  { %v4049_v14 = vpop.f32.mrb[31].mxu1 }
 0x2f3   :  { %v3438_v15 = vadd.f32 %v4047_v12, %v3398_v11 }
 0x344   :  { %v3517_v16 = vpop.f32.mrb[8].mxu0 }
 0x345   :  { %v4085_v17 = vpop.f32.mrb[9].mxu0 }
 0x346   :  { %v3520_v19 = vpop.f32.mrb[10].mxu0 }
 0x347   :  { %v4086_v20 = vpop.f32.mrb[11].mxu0 }
 0x399   :  { %v4067_v21 = vpop.f32.mrb[32].mxu1 }
 0x39a   :  { %v4068_v22 = vpop.f32.mrb[33].mxu1 }
 0x39b   :  { %v4069_v23 = vadd.f32 %v4068_v22, %v4067_v21  ;;  %v4070_v25 = vpop.f32.mrb[34].mxu1 }
 0x39c   :  { %v4071_v26 = vpop.f32.mrb[35].mxu1 }
 0x39d   :  { %v3478_v27 = vadd.f32 %v4069_v23, %v3438_v15 }
 0x39f   :  { %v3518_v31 = vadd.f32 %v3517_v16, %v3478_v27 }
 0x3a1   :  { %3523 = vst [vmem:[#allocation11] sm:$0xff] %v3518_v31 }
 0x3a2   :  { %4800 = shalt.err (!%p4797_p2)
}
 0x3a3   :  { %s4801_s7 = scalar_lea.hbm %s5019_s5, 128 }
 0x3a4   :  { %p4802_p3 = scmp.ne.s32.totalorder %s5019_s5, %s4801_s7  ;;  %p4805_p4 = scmp.lt.u32.totalorder %s4801_s7, %s5019_s5 }
 0x3a6   :  { %p4807_p5 = pnand %p4805_p4, %p4802_p3 }
 0x3a8   :  { %4810 = shalt.err (!%p4807_p5)
}
 0x3a9   :  { %3533 = dma.vmem_to_hbm [thread:$0]  %s3531_s29, 128, %s5019_s5, [#allocation4]  }
 0x3aa   :  { %4817 = dma.done.wait [#allocation4], 128  }
 0x3ab   :  { %4818 = vsyncadd [#allocation4], 4294967168 }
 0x3ac   :  { %3537 = vsyncpa [#allocation3], 1 }
 0x3ad   :  { %3538 = vsyncpa [#allocation6], 1 }
 0x3ae   :  { %3539 = vsyncpa [#allocation9], 1 }
 0x3af   :  { %3540 = vsyncpa [#allocation4], 1 }

</bundles_post_ra>
